<compile_context>
chip_gen: v5e
topology: v5e:2x2
jax: 0.10.0
libtpu: 0.0.40
codegen_flags: <defaults>
</compile_context>

<pallas_src>
import math
from functools import partial

import jax
import jax.numpy as jnp
from jax.experimental import pallas as pl
from jax.experimental.pallas import tpu as pltpu

# ---- model config (matches a small nn.TransformerEncoderLayer stack) ----
D_MODEL = 32
N_HEAD = 4
D_HEAD = D_MODEL // N_HEAD
D_FF = 64
NUM_LAYERS = 2
LN_EPS = 1e-5


def _layer_norm(x, gamma, beta):
    mu = jnp.mean(x, axis=-1, keepdims=True)
    var = jnp.mean((x - mu) ** 2, axis=-1, keepdims=True)
    return (x - mu) * jax.lax.rsqrt(var + LN_EPS) * gamma + beta


# ---------------------------------------------------------------------------
# Fused Pallas kernel: [layer0 -> layer1 -> final LayerNorm], whole batch at once
# ---------------------------------------------------------------------------
def encoder_kernel(x_ref, wqkv_ref, bqkv_ref, wo_ref, w1_ref, b1_ref, w2_ref,
                   vec_ref, lnf_ref, out_ref, *, batch, seq):
    D, H, Dh = D_MODEL, N_HEAD, D_HEAD
    x = x_ref[...]                                   # (B*S, D): batch folded into sublanes

    for l in range(NUM_LAYERS):                      # static unroll; static layer indices
        wqkv = wqkv_ref[l]                           # (D, 3D)  [q|k|v] columns, q pre-scaled
        bqkv = bqkv_ref[l]                           # (1, 3D)  q bias pre-scaled
        wo = wo_ref[l]                               # (D, D)
        w1 = w1_ref[l]                               # (D, DFF)
        b1 = b1_ref[l]                               # (1, DFF)
        w2 = w2_ref[l]                               # (DFF, D)
        vec = vec_ref[l]                             # (6, D): [bo, b2, g1, bt1, g2, bt2]
        bo, b2 = vec[0:1], vec[1:2]
        g1, bt1, g2, bt2 = vec[2:3], vec[3:4], vec[4:5], vec[5:6]

        # ---- fused QKV projection: one lane-dense (B*S,D)@(D,3D) matmul ----
        qkv = jnp.dot(x, wqkv, preferred_element_type=jnp.float32) + bqkv    # (B*S, 3D)
        q2 = qkv[:, 0:D]                              # (B*S, D)  already scaled by 1/sqrt(Dh)
        kT2 = qkv[:, D:2 * D].T                       # (D, B*S)  ONE transpose per layer
        v2 = qkv[:, 2 * D:3 * D]                      # (B*S, D)

        # Per-(batch, head) groups via static slices (no lane-dim reshapes).
        q_g = jnp.stack([q2[b * seq:(b + 1) * seq, h * Dh:(h + 1) * Dh]
                         for b in range(batch) for h in range(H)], axis=0)    # (G, S, Dh)
        kT_g = jnp.stack([kT2[h * Dh:(h + 1) * Dh, b * seq:(b + 1) * seq]
                          for b in range(batch) for h in range(H)], axis=0)   # (G, Dh, S)
        v_g = jnp.stack([v2[b * seq:(b + 1) * seq, h * Dh:(h + 1) * Dh]
                         for b in range(batch) for h in range(H)], axis=0)    # (G, S, Dh)

        # ---- attention core (natural MXU-form contractions, no extra transposes) ----
        s = jnp.einsum('gqd,gdk->gqk', q_g, kT_g,
                       preferred_element_type=jnp.float32)                    # (G, S, S)
        s = s - jnp.max(s, axis=-1, keepdims=True)
        p = jnp.exp(s)
        p = p * pl.reciprocal(jnp.sum(p, axis=-1, keepdims=True), approx=False)
        ctx = jnp.einsum('gqk,gkd->gqd', p, v_g,
                         preferred_element_type=jnp.float32)                  # (G, S, Dh)

        # ---- merge heads by lane-concat, then one (B*S,D)@(D,D) out-projection ----
        ctx_cat = jnp.concatenate(
            [jnp.concatenate([ctx[b * H + h] for h in range(H)], axis=1)      # (S, D)
             for b in range(batch)], axis=0)                                  # (B*S, D)
        attn = jnp.dot(ctx_cat, wo, preferred_element_type=jnp.float32) + bo

        # ---- residual + LayerNorm 1 (post-norm, PyTorch default) ----
        x1 = _layer_norm(x + attn, g1, bt1)

        # ---- feed-forward: Linear -> ReLU -> Linear ----
        hmid = jnp.dot(x1, w1, preferred_element_type=jnp.float32) + b1
        hmid = jnp.maximum(hmid, 0.0)
        ff = jnp.dot(hmid, w2, preferred_element_type=jnp.float32) + b2

        # ---- residual + LayerNorm 2 ----
        x = _layer_norm(x1 + ff, g2, bt2)

    # ---- final encoder LayerNorm ----
    lnf = lnf_ref[...]
    out_ref[...] = _layer_norm(x, lnf[0:1], lnf[1:2]).astype(out_ref.dtype)


# ---------------------------------------------------------------------------
# Wrapper: gridless, single invocation, everything resident in VMEM.
# ---------------------------------------------------------------------------
def custom_transformer_encoder(x, packed):
    # mask / src_key_padding_mask / block_mask are None in this setup.
    B, S, D = x.shape
    x2 = x.reshape(B * S, D)                         # free wrapper-side reshape (contiguous)
    args = [x2, packed["wqkv"], packed["bqkv"], packed["wo"], packed["w1"],
            packed["b1"], packed["w2"], packed["vec"], packed["lnf"]]
    out2 = pl.pallas_call(
        partial(encoder_kernel, batch=B, seq=S),
        out_shape=jax.ShapeDtypeStruct((B * S, D), x.dtype),
        in_specs=[pl.BlockSpec(memory_space=pltpu.MemorySpace.VMEM) for _ in args],
        out_specs=pl.BlockSpec(memory_space=pltpu.MemorySpace.VMEM),
    )(*args)
    return out2.reshape(B, S, D)


# ---------------------------------------------------------------------------
# Deterministic parameter init (shapes follow nn.TransformerEncoderLayer) and
# host-side packing into the fused layout the kernel consumes.
# ---------------------------------------------------------------------------
def _linear_init(key, fan_in, fan_out):
    kw, kb = jax.random.split(key)
    bound = 1.0 / math.sqrt(fan_in)
    w = jax.random.uniform(kw, (fan_in, fan_out), jnp.float32, -bound, bound)
    b = jax.random.uniform(kb, (1, fan_out), jnp.float32, -bound, bound)
    return w, b


def init_params(key):
    scale = 1.0 / math.sqrt(D_HEAD)                  # folded into q weights/bias (one-time)
    raw_layers = []
    wqkv_l, bqkv_l, wo_l, w1_l, b1_l, w2_l, vec_l = ([] for _ in range(7))
    ones = jnp.ones((1, D_MODEL), jnp.float32)
    zeros = jnp.zeros((1, D_MODEL), jnp.float32)
    for _ in range(NUM_LAYERS):
        key, kq, kk, kv, ko, k1, k2 = jax.random.split(key, 7)
        wq, bq = _linear_init(kq, D_MODEL, D_MODEL)
        wk, bk = _linear_init(kk, D_MODEL, D_MODEL)
        wv, bv = _linear_init(kv, D_MODEL, D_MODEL)
        wo, bo = _linear_init(ko, D_MODEL, D_MODEL)
        w1, b1 = _linear_init(k1, D_MODEL, D_FF)
        w2, b2 = _linear_init(k2, D_FF, D_MODEL)
        raw_layers.append(dict(wq=wq, bq=bq, wk=wk, bk=bk, wv=wv, bv=bv,
                               wo=wo, bo=bo, w1=w1, b1=b1, w2=w2, b2=b2,
                               g1=ones, bt1=zeros, g2=ones, bt2=zeros))
        # fused QKV slab (D, 3D), q part pre-scaled by 1/sqrt(Dh)
        wqkv_l.append(jnp.concatenate([wq * scale, wk, wv], axis=1))
        bqkv_l.append(jnp.concatenate([bq * scale, bk, bv], axis=1))
        wo_l.append(wo)
        w1_l.append(w1)
        b1_l.append(b1)
        w2_l.append(w2)
        # packed D-wide vectors, rows: [bo, b2, ln1_g, ln1_b, ln2_g, ln2_b]
        vec_l.append(jnp.concatenate([bo, b2, ones, zeros, ones, zeros], axis=0))

    packed = dict(
        wqkv=jnp.stack(wqkv_l), bqkv=jnp.stack(bqkv_l), wo=jnp.stack(wo_l),
        w1=jnp.stack(w1_l), b1=jnp.stack(b1_l), w2=jnp.stack(w2_l),
        vec=jnp.stack(vec_l),
        lnf=jnp.concatenate([ones, zeros], axis=0),  # (2, D): [gamma, beta]
    )
    raw = dict(layers=raw_layers, norm_g=ones, norm_b=zeros)
    return packed, raw


# ---------------------------------------------------------------------------
# Pure-JAX reference of the same forward pass (runtime sanity check)
# ---------------------------------------------------------------------------
def _reference_forward(x, raw):
    def ln(t, g, b):
        mu = t.mean(-1, keepdims=True)
        var = ((t - mu) ** 2).mean(-1, keepdims=True)
        return (t - mu) / jnp.sqrt(var + LN_EPS) * g + b

    out = x
    B, S, _ = x.shape
    for p in raw["layers"]:
        q = out @ p["wq"] + p["bq"]
        k = out @ p["wk"] + p["bk"]
        v = out @ p["wv"] + p["bv"]
        q = q.reshape(B, S, N_HEAD, D_HEAD).transpose(0, 2, 1, 3)
        k = k.reshape(B, S, N_HEAD, D_HEAD).transpose(0, 2, 1, 3)
        v = v.reshape(B, S, N_HEAD, D_HEAD).transpose(0, 2, 1, 3)
        s = jnp.einsum('bhqd,bhkd->bhqk', q, k) / math.sqrt(D_HEAD)
        a = jax.nn.softmax(s, axis=-1)
        ctx = jnp.einsum('bhqk,bhkd->bhqd', a, v)
        ctx = ctx.transpose(0, 2, 1, 3).reshape(B, S, D_MODEL)
        attn = ctx @ p["wo"] + p["bo"]
        x1 = ln(out + attn, p["g1"], p["bt1"])
        ff = jnp.maximum(x1 @ p["w1"] + p["b1"], 0.0) @ p["w2"] + p["b2"]
        out = ln(x1 + ff, p["g2"], p["bt2"])
    return ln(out, raw["norm_g"], raw["norm_b"])


if __name__ == "__main__":
    key = jax.random.PRNGKey(0)
    kx, kp = jax.random.split(key)
    B, S = 2, 8
    x = jax.random.normal(kx, (B, S, D_MODEL), jnp.float32)
    packed, raw = init_params(kp)

    out = custom_transformer_encoder(x, packed)
    out = jax.block_until_ready(out)

    assert out.shape == (B, S, D_MODEL)
    assert bool(jnp.all(jnp.isfinite(out)))
    ref = _reference_forward(x, raw)
    assert bool(jnp.allclose(out, ref, rtol=1e-2, atol=1e-2)), "kernel vs reference mismatch"
    print("KERNEL_OK")
</pallas_src>

<mosaic_0001>
module attributes {stable_mosaic.version = 11 : i64} {
  func.func @encoder_kernel(%arg0: memref<16x32xf32, #tpu.memory_space<vmem>>, %arg1: memref<2x32x96xf32, #tpu.memory_space<vmem>>, %arg2: memref<2x1x96xf32, #tpu.memory_space<vmem>>, %arg3: memref<2x32x32xf32, #tpu.memory_space<vmem>>, %arg4: memref<2x32x64xf32, #tpu.memory_space<vmem>>, %arg5: memref<2x1x64xf32, #tpu.memory_space<vmem>>, %arg6: memref<2x64x32xf32, #tpu.memory_space<vmem>>, %arg7: memref<2x6x32xf32, #tpu.memory_space<vmem>>, %arg8: memref<2x32xf32, #tpu.memory_space<vmem>>, %arg9: memref<16x32xf32, #tpu.memory_space<vmem>>) attributes {dimension_semantics = [], scalar_prefetch = 0 : i64, scratch_operands = 0 : i64, tpu.core_type = #tpu.core_type<tc>} {
    %c0 = arith.constant 0 : index
    %c0_0 = arith.constant 0 : index
    %0 = vector.load %arg0[%c0, %c0_0] : memref<16x32xf32, #tpu.memory_space<vmem>>, vector<16x32xf32>
    %c0_1 = arith.constant 0 : index
    %c0_2 = arith.constant 0 : index
    %c0_3 = arith.constant 0 : index
    %1 = vector.load %arg1[%c0_1, %c0_2, %c0_3] : memref<2x32x96xf32, #tpu.memory_space<vmem>>, vector<1x32x96xf32>
    %2 = vector.shape_cast %1 : vector<1x32x96xf32> to vector<32x96xf32>
    %c0_4 = arith.constant 0 : index
    %c0_5 = arith.constant 0 : index
    %c0_6 = arith.constant 0 : index
    %3 = vector.load %arg2[%c0_4, %c0_5, %c0_6] : memref<2x1x96xf32, #tpu.memory_space<vmem>>, vector<1x1x96xf32>
    %4 = vector.shape_cast %3 : vector<1x1x96xf32> to vector<1x96xf32>
    %c0_7 = arith.constant 0 : index
    %c0_8 = arith.constant 0 : index
    %c0_9 = arith.constant 0 : index
    %5 = vector.load %arg3[%c0_7, %c0_8, %c0_9] : memref<2x32x32xf32, #tpu.memory_space<vmem>>, vector<1x32x32xf32>
    %6 = vector.shape_cast %5 : vector<1x32x32xf32> to vector<32x32xf32>
    %c0_10 = arith.constant 0 : index
    %c0_11 = arith.constant 0 : index
    %c0_12 = arith.constant 0 : index
    %7 = vector.load %arg4[%c0_10, %c0_11, %c0_12] : memref<2x32x64xf32, #tpu.memory_space<vmem>>, vector<1x32x64xf32>
    %8 = vector.shape_cast %7 : vector<1x32x64xf32> to vector<32x64xf32>
    %c0_13 = arith.constant 0 : index
    %c0_14 = arith.constant 0 : index
    %c0_15 = arith.constant 0 : index
    %9 = vector.load %arg5[%c0_13, %c0_14, %c0_15] : memref<2x1x64xf32, #tpu.memory_space<vmem>>, vector<1x1x64xf32>
    %10 = vector.shape_cast %9 : vector<1x1x64xf32> to vector<1x64xf32>
    %c0_16 = arith.constant 0 : index
    %c0_17 = arith.constant 0 : index
    %c0_18 = arith.constant 0 : index
    %11 = vector.load %arg6[%c0_16, %c0_17, %c0_18] : memref<2x64x32xf32, #tpu.memory_space<vmem>>, vector<1x64x32xf32>
    %12 = vector.shape_cast %11 : vector<1x64x32xf32> to vector<64x32xf32>
    %c0_19 = arith.constant 0 : index
    %c0_20 = arith.constant 0 : index
    %c0_21 = arith.constant 0 : index
    %13 = vector.load %arg7[%c0_19, %c0_20, %c0_21] : memref<2x6x32xf32, #tpu.memory_space<vmem>>, vector<1x6x32xf32>
    %14 = vector.shape_cast %13 : vector<1x6x32xf32> to vector<6x32xf32>
    %15 = vector.extract_strided_slice %14 {offsets = [0, 0], sizes = [1, 32], strides = [1, 1]} : vector<6x32xf32> to vector<1x32xf32>
    %16 = vector.extract_strided_slice %14 {offsets = [1, 0], sizes = [1, 32], strides = [1, 1]} : vector<6x32xf32> to vector<1x32xf32>
    %17 = vector.extract_strided_slice %14 {offsets = [2, 0], sizes = [1, 32], strides = [1, 1]} : vector<6x32xf32> to vector<1x32xf32>
    %18 = vector.extract_strided_slice %14 {offsets = [3, 0], sizes = [1, 32], strides = [1, 1]} : vector<6x32xf32> to vector<1x32xf32>
    %19 = vector.extract_strided_slice %14 {offsets = [4, 0], sizes = [1, 32], strides = [1, 1]} : vector<6x32xf32> to vector<1x32xf32>
    %20 = vector.extract_strided_slice %14 {offsets = [5, 0], sizes = [1, 32], strides = [1, 1]} : vector<6x32xf32> to vector<1x32xf32>
    %cst = arith.constant dense<0.000000e+00> : vector<16x96xf32>
    %21 = tpu.matmul %0, %2, %cst {dimension_numbers = #tpu.dot_dimension_numbers<[1], [0], [0], [1], [0, 0, 1, 1], [], []>} : vector<16x32xf32>, vector<32x96xf32>, vector<16x96xf32> -> vector<16x96xf32>
    %22 = vector.broadcast %4 : vector<1x96xf32> to vector<16x96xf32>
    %23 = arith.addf %21, %22 : vector<16x96xf32>
    %24 = vector.extract_strided_slice %23 {offsets = [0, 0], sizes = [16, 32], strides = [1, 1]} : vector<16x96xf32> to vector<16x32xf32>
    %25 = vector.extract_strided_slice %23 {offsets = [0, 32], sizes = [16, 32], strides = [1, 1]} : vector<16x96xf32> to vector<16x32xf32>
    %26 = tpu.transpose %25, [1, 0] : vector<16x32xf32> -> vector<32x16xf32>
    %27 = vector.extract_strided_slice %23 {offsets = [0, 64], sizes = [16, 32], strides = [1, 1]} : vector<16x96xf32> to vector<16x32xf32>
    %28 = vector.extract_strided_slice %24 {offsets = [0, 0], sizes = [8, 8], strides = [1, 1]} : vector<16x32xf32> to vector<8x8xf32>
    %29 = vector.extract_strided_slice %24 {offsets = [0, 8], sizes = [8, 8], strides = [1, 1]} : vector<16x32xf32> to vector<8x8xf32>
    %30 = vector.extract_strided_slice %24 {offsets = [0, 16], sizes = [8, 8], strides = [1, 1]} : vector<16x32xf32> to vector<8x8xf32>
    %31 = vector.extract_strided_slice %24 {offsets = [0, 24], sizes = [8, 8], strides = [1, 1]} : vector<16x32xf32> to vector<8x8xf32>
    %32 = vector.extract_strided_slice %24 {offsets = [8, 0], sizes = [8, 8], strides = [1, 1]} : vector<16x32xf32> to vector<8x8xf32>
    %33 = vector.extract_strided_slice %24 {offsets = [8, 8], sizes = [8, 8], strides = [1, 1]} : vector<16x32xf32> to vector<8x8xf32>
    %34 = vector.extract_strided_slice %24 {offsets = [8, 16], sizes = [8, 8], strides = [1, 1]} : vector<16x32xf32> to vector<8x8xf32>
    %35 = vector.extract_strided_slice %24 {offsets = [8, 24], sizes = [8, 8], strides = [1, 1]} : vector<16x32xf32> to vector<8x8xf32>
    %36 = vector.shape_cast %28 : vector<8x8xf32> to vector<1x8x8xf32>
    %37 = vector.shape_cast %29 : vector<8x8xf32> to vector<1x8x8xf32>
    %38 = vector.shape_cast %30 : vector<8x8xf32> to vector<1x8x8xf32>
    %39 = vector.shape_cast %31 : vector<8x8xf32> to vector<1x8x8xf32>
    %40 = vector.shape_cast %32 : vector<8x8xf32> to vector<1x8x8xf32>
    %41 = vector.shape_cast %33 : vector<8x8xf32> to vector<1x8x8xf32>
    %42 = vector.shape_cast %34 : vector<8x8xf32> to vector<1x8x8xf32>
    %43 = vector.shape_cast %35 : vector<8x8xf32> to vector<1x8x8xf32>
    %44 = tpu.concatenate %36, %37, %38, %39, %40, %41, %42, %43 in 0 : vector<1x8x8xf32>, vector<1x8x8xf32>, vector<1x8x8xf32>, vector<1x8x8xf32>, vector<1x8x8xf32>, vector<1x8x8xf32>, vector<1x8x8xf32>, vector<1x8x8xf32> -> vector<8x8x8xf32>
    %45 = vector.extract_strided_slice %26 {offsets = [0, 0], sizes = [8, 8], strides = [1, 1]} : vector<32x16xf32> to vector<8x8xf32>
    %46 = vector.extract_strided_slice %26 {offsets = [8, 0], sizes = [8, 8], strides = [1, 1]} : vector<32x16xf32> to vector<8x8xf32>
    %47 = vector.extract_strided_slice %26 {offsets = [16, 0], sizes = [8, 8], strides = [1, 1]} : vector<32x16xf32> to vector<8x8xf32>
    %48 = vector.extract_strided_slice %26 {offsets = [24, 0], sizes = [8, 8], strides = [1, 1]} : vector<32x16xf32> to vector<8x8xf32>
    %49 = vector.extract_strided_slice %26 {offsets = [0, 8], sizes = [8, 8], strides = [1, 1]} : vector<32x16xf32> to vector<8x8xf32>
    %50 = vector.extract_strided_slice %26 {offsets = [8, 8], sizes = [8, 8], strides = [1, 1]} : vector<32x16xf32> to vector<8x8xf32>
    %51 = vector.extract_strided_slice %26 {offsets = [16, 8], sizes = [8, 8], strides = [1, 1]} : vector<32x16xf32> to vector<8x8xf32>
    %52 = vector.extract_strided_slice %26 {offsets = [24, 8], sizes = [8, 8], strides = [1, 1]} : vector<32x16xf32> to vector<8x8xf32>
    %53 = vector.shape_cast %45 : vector<8x8xf32> to vector<1x8x8xf32>
    %54 = vector.shape_cast %46 : vector<8x8xf32> to vector<1x8x8xf32>
    %55 = vector.shape_cast %47 : vector<8x8xf32> to vector<1x8x8xf32>
    %56 = vector.shape_cast %48 : vector<8x8xf32> to vector<1x8x8xf32>
    %57 = vector.shape_cast %49 : vector<8x8xf32> to vector<1x8x8xf32>
    %58 = vector.shape_cast %50 : vector<8x8xf32> to vector<1x8x8xf32>
    %59 = vector.shape_cast %51 : vector<8x8xf32> to vector<1x8x8xf32>
    %60 = vector.shape_cast %52 : vector<8x8xf32> to vector<1x8x8xf32>
    %61 = tpu.concatenate %53, %54, %55, %56, %57, %58, %59, %60 in 0 : vector<1x8x8xf32>, vector<1x8x8xf32>, vector<1x8x8xf32>, vector<1x8x8xf32>, vector<1x8x8xf32>, vector<1x8x8xf32>, vector<1x8x8xf32>, vector<1x8x8xf32> -> vector<8x8x8xf32>
    %62 = vector.extract_strided_slice %27 {offsets = [0, 0], sizes = [8, 8], strides = [1, 1]} : vector<16x32xf32> to vector<8x8xf32>
    %63 = vector.extract_strided_slice %27 {offsets = [0, 8], sizes = [8, 8], strides = [1, 1]} : vector<16x32xf32> to vector<8x8xf32>
    %64 = vector.extract_strided_slice %27 {offsets = [0, 16], sizes = [8, 8], strides = [1, 1]} : vector<16x32xf32> to vector<8x8xf32>
    %65 = vector.extract_strided_slice %27 {offsets = [0, 24], sizes = [8, 8], strides = [1, 1]} : vector<16x32xf32> to vector<8x8xf32>
    %66 = vector.extract_strided_slice %27 {offsets = [8, 0], sizes = [8, 8], strides = [1, 1]} : vector<16x32xf32> to vector<8x8xf32>
    %67 = vector.extract_strided_slice %27 {offsets = [8, 8], sizes = [8, 8], strides = [1, 1]} : vector<16x32xf32> to vector<8x8xf32>
    %68 = vector.extract_strided_slice %27 {offsets = [8, 16], sizes = [8, 8], strides = [1, 1]} : vector<16x32xf32> to vector<8x8xf32>
    %69 = vector.extract_strided_slice %27 {offsets = [8, 24], sizes = [8, 8], strides = [1, 1]} : vector<16x32xf32> to vector<8x8xf32>
    %70 = vector.shape_cast %62 : vector<8x8xf32> to vector<1x8x8xf32>
    %71 = vector.shape_cast %63 : vector<8x8xf32> to vector<1x8x8xf32>
    %72 = vector.shape_cast %64 : vector<8x8xf32> to vector<1x8x8xf32>
    %73 = vector.shape_cast %65 : vector<8x8xf32> to vector<1x8x8xf32>
    %74 = vector.shape_cast %66 : vector<8x8xf32> to vector<1x8x8xf32>
    %75 = vector.shape_cast %67 : vector<8x8xf32> to vector<1x8x8xf32>
    %76 = vector.shape_cast %68 : vector<8x8xf32> to vector<1x8x8xf32>
    %77 = vector.shape_cast %69 : vector<8x8xf32> to vector<1x8x8xf32>
    %78 = tpu.concatenate %70, %71, %72, %73, %74, %75, %76, %77 in 0 : vector<1x8x8xf32>, vector<1x8x8xf32>, vector<1x8x8xf32>, vector<1x8x8xf32>, vector<1x8x8xf32>, vector<1x8x8xf32>, vector<1x8x8xf32>, vector<1x8x8xf32> -> vector<8x8x8xf32>
    "tpu.trace_start"() <{level = 10 : i32, message = "gqd,gdk->gqk"}> : () -> ()
    %cst_22 = arith.constant dense<0.000000e+00> : vector<8x8x8xf32>
    %79 = tpu.matmul %44, %61, %cst_22 {dimension_numbers = #tpu.dot_dimension_numbers<[2], [1], [1], [2], [0, 0, 0, 1, 1, 2], [0], [0]>} : vector<8x8x8xf32>, vector<8x8x8xf32>, vector<8x8x8xf32> -> vector<8x8x8xf32>
    "tpu.trace_stop"() : () -> ()
    %cst_23 = arith.constant dense<0xFF800000> : vector<8x8xf32>
    %80 = vector.multi_reduction <maximumf>, %79, %cst_23 [2] : vector<8x8x8xf32> to vector<8x8xf32>
    %81 = vector.shape_cast %80 : vector<8x8xf32> to vector<8x8x1xf32>
    %82 = vector.broadcast %81 : vector<8x8x1xf32> to vector<8x8x8xf32>
    %83 = arith.subf %79, %82 : vector<8x8x8xf32>
    %84 = math.exp %83 : vector<8x8x8xf32>
    %cst_24 = arith.constant dense<0.000000e+00> : vector<8x8xf32>
    %85 = vector.multi_reduction <add>, %84, %cst_24 [2] : vector<8x8x8xf32> to vector<8x8xf32>
    %86 = vector.shape_cast %85 : vector<8x8xf32> to vector<8x8x1xf32>
    %87 = tpu.reciprocal %86 : vector<8x8x1xf32> -> vector<8x8x1xf32>
    %88 = vector.broadcast %87 : vector<8x8x1xf32> to vector<8x8x8xf32>
    %89 = arith.mulf %84, %88 : vector<8x8x8xf32>
    "tpu.trace_start"() <{level = 10 : i32, message = "gqk,gkd->gqd"}> : () -> ()
    %cst_25 = arith.constant dense<0.000000e+00> : vector<8x8x8xf32>
    %90 = tpu.matmul %89, %78, %cst_25 {dimension_numbers = #tpu.dot_dimension_numbers<[2], [1], [1], [2], [0, 0, 0, 1, 1, 2], [0], [0]>} : vector<8x8x8xf32>, vector<8x8x8xf32>, vector<8x8x8xf32> -> vector<8x8x8xf32>
    "tpu.trace_stop"() : () -> ()
    %91 = vector.extract_strided_slice %90 {offsets = [0, 0, 0], sizes = [1, 8, 8], strides = [1, 1, 1]} : vector<8x8x8xf32> to vector<1x8x8xf32>
    %92 = vector.shape_cast %91 : vector<1x8x8xf32> to vector<8x8xf32>
    %93 = vector.extract_strided_slice %90 {offsets = [1, 0, 0], sizes = [1, 8, 8], strides = [1, 1, 1]} : vector<8x8x8xf32> to vector<1x8x8xf32>
    %94 = vector.shape_cast %93 : vector<1x8x8xf32> to vector<8x8xf32>
    %95 = vector.extract_strided_slice %90 {offsets = [2, 0, 0], sizes = [1, 8, 8], strides = [1, 1, 1]} : vector<8x8x8xf32> to vector<1x8x8xf32>
    %96 = vector.shape_cast %95 : vector<1x8x8xf32> to vector<8x8xf32>
    %97 = vector.extract_strided_slice %90 {offsets = [3, 0, 0], sizes = [1, 8, 8], strides = [1, 1, 1]} : vector<8x8x8xf32> to vector<1x8x8xf32>
    %98 = vector.shape_cast %97 : vector<1x8x8xf32> to vector<8x8xf32>
    %99 = tpu.concatenate %92, %94, %96, %98 in 1 : vector<8x8xf32>, vector<8x8xf32>, vector<8x8xf32>, vector<8x8xf32> -> vector<8x32xf32>
    %100 = vector.extract_strided_slice %90 {offsets = [4, 0, 0], sizes = [1, 8, 8], strides = [1, 1, 1]} : vector<8x8x8xf32> to vector<1x8x8xf32>
    %101 = vector.shape_cast %100 : vector<1x8x8xf32> to vector<8x8xf32>
    %102 = vector.extract_strided_slice %90 {offsets = [5, 0, 0], sizes = [1, 8, 8], strides = [1, 1, 1]} : vector<8x8x8xf32> to vector<1x8x8xf32>
    %103 = vector.shape_cast %102 : vector<1x8x8xf32> to vector<8x8xf32>
    %104 = vector.extract_strided_slice %90 {offsets = [6, 0, 0], sizes = [1, 8, 8], strides = [1, 1, 1]} : vector<8x8x8xf32> to vector<1x8x8xf32>
    %105 = vector.shape_cast %104 : vector<1x8x8xf32> to vector<8x8xf32>
    %106 = vector.extract_strided_slice %90 {offsets = [7, 0, 0], sizes = [1, 8, 8], strides = [1, 1, 1]} : vector<8x8x8xf32> to vector<1x8x8xf32>
    %107 = vector.shape_cast %106 : vector<1x8x8xf32> to vector<8x8xf32>
    %108 = tpu.concatenate %101, %103, %105, %107 in 1 : vector<8x8xf32>, vector<8x8xf32>, vector<8x8xf32>, vector<8x8xf32> -> vector<8x32xf32>
    %109 = tpu.concatenate %99, %108 in 0 : vector<8x32xf32>, vector<8x32xf32> -> vector<16x32xf32>
    %cst_26 = arith.constant dense<0.000000e+00> : vector<16x32xf32>
    %110 = tpu.matmul %109, %6, %cst_26 {dimension_numbers = #tpu.dot_dimension_numbers<[1], [0], [0], [1], [0, 0, 1, 1], [], []>} : vector<16x32xf32>, vector<32x32xf32>, vector<16x32xf32> -> vector<16x32xf32>
    %111 = vector.broadcast %15 : vector<1x32xf32> to vector<16x32xf32>
    %112 = arith.addf %110, %111 : vector<16x32xf32>
    %113 = arith.addf %0, %112 : vector<16x32xf32>
    %cst_27 = arith.constant dense<0.000000e+00> : vector<16xf32>
    %114 = vector.multi_reduction <add>, %113, %cst_27 [1] : vector<16x32xf32> to vector<16xf32>
    %115 = vector.shape_cast %114 : vector<16xf32> to vector<16x1xf32>
    %cst_28 = arith.constant 3.200000e+01 : f32
    %116 = vector.broadcast %cst_28 : f32 to vector<16x1xf32>
    %117 = arith.divf %115, %116 : vector<16x1xf32>
    %118 = vector.broadcast %117 : vector<16x1xf32> to vector<16x32xf32>
    %119 = arith.subf %113, %118 : vector<16x32xf32>
    %120 = arith.mulf %119, %119 : vector<16x32xf32>
    %cst_29 = arith.constant dense<0.000000e+00> : vector<16xf32>
    %121 = vector.multi_reduction <add>, %120, %cst_29 [1] : vector<16x32xf32> to vector<16xf32>
    %122 = vector.shape_cast %121 : vector<16xf32> to vector<16x1xf32>
    %cst_30 = arith.constant 3.200000e+01 : f32
    %123 = vector.broadcast %cst_30 : f32 to vector<16x1xf32>
    %124 = arith.divf %122, %123 : vector<16x1xf32>
    %125 = vector.broadcast %117 : vector<16x1xf32> to vector<16x32xf32>
    %126 = arith.subf %113, %125 : vector<16x32xf32>
    %cst_31 = arith.constant 9.99999974E-6 : f32
    %127 = vector.broadcast %cst_31 : f32 to vector<16x1xf32>
    %128 = arith.addf %124, %127 : vector<16x1xf32>
    %129 = math.rsqrt %128 : vector<16x1xf32>
    %130 = vector.broadcast %129 : vector<16x1xf32> to vector<16x32xf32>
    %131 = arith.mulf %126, %130 : vector<16x32xf32>
    %132 = vector.broadcast %17 : vector<1x32xf32> to vector<16x32xf32>
    %133 = arith.mulf %131, %132 : vector<16x32xf32>
    %134 = vector.broadcast %18 : vector<1x32xf32> to vector<16x32xf32>
    %135 = arith.addf %133, %134 : vector<16x32xf32>
    %cst_32 = arith.constant dense<0.000000e+00> : vector<16x64xf32>
    %136 = tpu.matmul %135, %8, %cst_32 {dimension_numbers = #tpu.dot_dimension_numbers<[1], [0], [0], [1], [0, 0, 1, 1], [], []>} : vector<16x32xf32>, vector<32x64xf32>, vector<16x64xf32> -> vector<16x64xf32>
    %137 = vector.broadcast %10 : vector<1x64xf32> to vector<16x64xf32>
    %138 = arith.addf %136, %137 : vector<16x64xf32>
    %cst_33 = arith.constant 0.000000e+00 : f32
    %139 = vector.broadcast %cst_33 : f32 to vector<16x64xf32>
    %140 = arith.maximumf %138, %139 : vector<16x64xf32>
    %cst_34 = arith.constant dense<0.000000e+00> : vector<16x32xf32>
    %141 = tpu.matmul %140, %12, %cst_34 {dimension_numbers = #tpu.dot_dimension_numbers<[1], [0], [0], [1], [0, 0, 1, 1], [], []>} : vector<16x64xf32>, vector<64x32xf32>, vector<16x32xf32> -> vector<16x32xf32>
    %142 = vector.broadcast %16 : vector<1x32xf32> to vector<16x32xf32>
    %143 = arith.addf %141, %142 : vector<16x32xf32>
    %144 = arith.addf %135, %143 : vector<16x32xf32>
    %cst_35 = arith.constant dense<0.000000e+00> : vector<16xf32>
    %145 = vector.multi_reduction <add>, %144, %cst_35 [1] : vector<16x32xf32> to vector<16xf32>
    %146 = vector.shape_cast %145 : vector<16xf32> to vector<16x1xf32>
    %cst_36 = arith.constant 3.200000e+01 : f32
    %147 = vector.broadcast %cst_36 : f32 to vector<16x1xf32>
    %148 = arith.divf %146, %147 : vector<16x1xf32>
    %149 = vector.broadcast %148 : vector<16x1xf32> to vector<16x32xf32>
    %150 = arith.subf %144, %149 : vector<16x32xf32>
    %151 = arith.mulf %150, %150 : vector<16x32xf32>
    %cst_37 = arith.constant dense<0.000000e+00> : vector<16xf32>
    %152 = vector.multi_reduction <add>, %151, %cst_37 [1] : vector<16x32xf32> to vector<16xf32>
    %153 = vector.shape_cast %152 : vector<16xf32> to vector<16x1xf32>
    %cst_38 = arith.constant 3.200000e+01 : f32
    %154 = vector.broadcast %cst_38 : f32 to vector<16x1xf32>
    %155 = arith.divf %153, %154 : vector<16x1xf32>
    %156 = vector.broadcast %148 : vector<16x1xf32> to vector<16x32xf32>
    %157 = arith.subf %144, %156 : vector<16x32xf32>
    %cst_39 = arith.constant 9.99999974E-6 : f32
    %158 = vector.broadcast %cst_39 : f32 to vector<16x1xf32>
    %159 = arith.addf %155, %158 : vector<16x1xf32>
    %160 = math.rsqrt %159 : vector<16x1xf32>
    %161 = vector.broadcast %160 : vector<16x1xf32> to vector<16x32xf32>
    %162 = arith.mulf %157, %161 : vector<16x32xf32>
    %163 = vector.broadcast %19 : vector<1x32xf32> to vector<16x32xf32>
    %164 = arith.mulf %162, %163 : vector<16x32xf32>
    %165 = vector.broadcast %20 : vector<1x32xf32> to vector<16x32xf32>
    %166 = arith.addf %164, %165 : vector<16x32xf32>
    %c1 = arith.constant 1 : index
    %c0_40 = arith.constant 0 : index
    %c0_41 = arith.constant 0 : index
    %167 = vector.load %arg1[%c1, %c0_40, %c0_41] : memref<2x32x96xf32, #tpu.memory_space<vmem>>, vector<1x32x96xf32>
    %168 = vector.shape_cast %167 : vector<1x32x96xf32> to vector<32x96xf32>
    %c1_42 = arith.constant 1 : index
    %c0_43 = arith.constant 0 : index
    %c0_44 = arith.constant 0 : index
    %169 = vector.load %arg2[%c1_42, %c0_43, %c0_44] : memref<2x1x96xf32, #tpu.memory_space<vmem>>, vector<1x1x96xf32>
    %170 = vector.shape_cast %169 : vector<1x1x96xf32> to vector<1x96xf32>
    %c1_45 = arith.constant 1 : index
    %c0_46 = arith.constant 0 : index
    %c0_47 = arith.constant 0 : index
    %171 = vector.load %arg3[%c1_45, %c0_46, %c0_47] : memref<2x32x32xf32, #tpu.memory_space<vmem>>, vector<1x32x32xf32>
    %172 = vector.shape_cast %171 : vector<1x32x32xf32> to vector<32x32xf32>
    %c1_48 = arith.constant 1 : index
    %c0_49 = arith.constant 0 : index
    %c0_50 = arith.constant 0 : index
    %173 = vector.load %arg4[%c1_48, %c0_49, %c0_50] : memref<2x32x64xf32, #tpu.memory_space<vmem>>, vector<1x32x64xf32>
    %174 = vector.shape_cast %173 : vector<1x32x64xf32> to vector<32x64xf32>
    %c1_51 = arith.constant 1 : index
    %c0_52 = arith.constant 0 : index
    %c0_53 = arith.constant 0 : index
    %175 = vector.load %arg5[%c1_51, %c0_52, %c0_53] : memref<2x1x64xf32, #tpu.memory_space<vmem>>, vector<1x1x64xf32>
    %176 = vector.shape_cast %175 : vector<1x1x64xf32> to vector<1x64xf32>
    %c1_54 = arith.constant 1 : index
    %c0_55 = arith.constant 0 : index
    %c0_56 = arith.constant 0 : index
    %177 = vector.load %arg6[%c1_54, %c0_55, %c0_56] : memref<2x64x32xf32, #tpu.memory_space<vmem>>, vector<1x64x32xf32>
    %178 = vector.shape_cast %177 : vector<1x64x32xf32> to vector<64x32xf32>
    %c1_57 = arith.constant 1 : index
    %c0_58 = arith.constant 0 : index
    %c0_59 = arith.constant 0 : index
    %179 = vector.load %arg7[%c1_57, %c0_58, %c0_59] : memref<2x6x32xf32, #tpu.memory_space<vmem>>, vector<1x6x32xf32>
    %180 = vector.shape_cast %179 : vector<1x6x32xf32> to vector<6x32xf32>
    %181 = vector.extract_strided_slice %180 {offsets = [0, 0], sizes = [1, 32], strides = [1, 1]} : vector<6x32xf32> to vector<1x32xf32>
    %182 = vector.extract_strided_slice %180 {offsets = [1, 0], sizes = [1, 32], strides = [1, 1]} : vector<6x32xf32> to vector<1x32xf32>
    %183 = vector.extract_strided_slice %180 {offsets = [2, 0], sizes = [1, 32], strides = [1, 1]} : vector<6x32xf32> to vector<1x32xf32>
    %184 = vector.extract_strided_slice %180 {offsets = [3, 0], sizes = [1, 32], strides = [1, 1]} : vector<6x32xf32> to vector<1x32xf32>
    %185 = vector.extract_strided_slice %180 {offsets = [4, 0], sizes = [1, 32], strides = [1, 1]} : vector<6x32xf32> to vector<1x32xf32>
    %186 = vector.extract_strided_slice %180 {offsets = [5, 0], sizes = [1, 32], strides = [1, 1]} : vector<6x32xf32> to vector<1x32xf32>
    %cst_60 = arith.constant dense<0.000000e+00> : vector<16x96xf32>
    %187 = tpu.matmul %166, %168, %cst_60 {dimension_numbers = #tpu.dot_dimension_numbers<[1], [0], [0], [1], [0, 0, 1, 1], [], []>} : vector<16x32xf32>, vector<32x96xf32>, vector<16x96xf32> -> vector<16x96xf32>
    %188 = vector.broadcast %170 : vector<1x96xf32> to vector<16x96xf32>
    %189 = arith.addf %187, %188 : vector<16x96xf32>
    %190 = vector.extract_strided_slice %189 {offsets = [0, 0], sizes = [16, 32], strides = [1, 1]} : vector<16x96xf32> to vector<16x32xf32>
    %191 = vector.extract_strided_slice %189 {offsets = [0, 32], sizes = [16, 32], strides = [1, 1]} : vector<16x96xf32> to vector<16x32xf32>
    %192 = tpu.transpose %191, [1, 0] : vector<16x32xf32> -> vector<32x16xf32>
    %193 = vector.extract_strided_slice %189 {offsets = [0, 64], sizes = [16, 32], strides = [1, 1]} : vector<16x96xf32> to vector<16x32xf32>
    %194 = vector.extract_strided_slice %190 {offsets = [0, 0], sizes = [8, 8], strides = [1, 1]} : vector<16x32xf32> to vector<8x8xf32>
    %195 = vector.extract_strided_slice %190 {offsets = [0, 8], sizes = [8, 8], strides = [1, 1]} : vector<16x32xf32> to vector<8x8xf32>
    %196 = vector.extract_strided_slice %190 {offsets = [0, 16], sizes = [8, 8], strides = [1, 1]} : vector<16x32xf32> to vector<8x8xf32>
    %197 = vector.extract_strided_slice %190 {offsets = [0, 24], sizes = [8, 8], strides = [1, 1]} : vector<16x32xf32> to vector<8x8xf32>
    %198 = vector.extract_strided_slice %190 {offsets = [8, 0], sizes = [8, 8], strides = [1, 1]} : vector<16x32xf32> to vector<8x8xf32>
    %199 = vector.extract_strided_slice %190 {offsets = [8, 8], sizes = [8, 8], strides = [1, 1]} : vector<16x32xf32> to vector<8x8xf32>
    %200 = vector.extract_strided_slice %190 {offsets = [8, 16], sizes = [8, 8], strides = [1, 1]} : vector<16x32xf32> to vector<8x8xf32>
    %201 = vector.extract_strided_slice %190 {offsets = [8, 24], sizes = [8, 8], strides = [1, 1]} : vector<16x32xf32> to vector<8x8xf32>
    %202 = vector.shape_cast %194 : vector<8x8xf32> to vector<1x8x8xf32>
    %203 = vector.shape_cast %195 : vector<8x8xf32> to vector<1x8x8xf32>
    %204 = vector.shape_cast %196 : vector<8x8xf32> to vector<1x8x8xf32>
    %205 = vector.shape_cast %197 : vector<8x8xf32> to vector<1x8x8xf32>
    %206 = vector.shape_cast %198 : vector<8x8xf32> to vector<1x8x8xf32>
    %207 = vector.shape_cast %199 : vector<8x8xf32> to vector<1x8x8xf32>
    %208 = vector.shape_cast %200 : vector<8x8xf32> to vector<1x8x8xf32>
    %209 = vector.shape_cast %201 : vector<8x8xf32> to vector<1x8x8xf32>
    %210 = tpu.concatenate %202, %203, %204, %205, %206, %207, %208, %209 in 0 : vector<1x8x8xf32>, vector<1x8x8xf32>, vector<1x8x8xf32>, vector<1x8x8xf32>, vector<1x8x8xf32>, vector<1x8x8xf32>, vector<1x8x8xf32>, vector<1x8x8xf32> -> vector<8x8x8xf32>
    %211 = vector.extract_strided_slice %192 {offsets = [0, 0], sizes = [8, 8], strides = [1, 1]} : vector<32x16xf32> to vector<8x8xf32>
    %212 = vector.extract_strided_slice %192 {offsets = [8, 0], sizes = [8, 8], strides = [1, 1]} : vector<32x16xf32> to vector<8x8xf32>
    %213 = vector.extract_strided_slice %192 {offsets = [16, 0], sizes = [8, 8], strides = [1, 1]} : vector<32x16xf32> to vector<8x8xf32>
    %214 = vector.extract_strided_slice %192 {offsets = [24, 0], sizes = [8, 8], strides = [1, 1]} : vector<32x16xf32> to vector<8x8xf32>
    %215 = vector.extract_strided_slice %192 {offsets = [0, 8], sizes = [8, 8], strides = [1, 1]} : vector<32x16xf32> to vector<8x8xf32>
    %216 = vector.extract_strided_slice %192 {offsets = [8, 8], sizes = [8, 8], strides = [1, 1]} : vector<32x16xf32> to vector<8x8xf32>
    %217 = vector.extract_strided_slice %192 {offsets = [16, 8], sizes = [8, 8], strides = [1, 1]} : vector<32x16xf32> to vector<8x8xf32>
    %218 = vector.extract_strided_slice %192 {offsets = [24, 8], sizes = [8, 8], strides = [1, 1]} : vector<32x16xf32> to vector<8x8xf32>
    %219 = vector.shape_cast %211 : vector<8x8xf32> to vector<1x8x8xf32>
    %220 = vector.shape_cast %212 : vector<8x8xf32> to vector<1x8x8xf32>
    %221 = vector.shape_cast %213 : vector<8x8xf32> to vector<1x8x8xf32>
    %222 = vector.shape_cast %214 : vector<8x8xf32> to vector<1x8x8xf32>
    %223 = vector.shape_cast %215 : vector<8x8xf32> to vector<1x8x8xf32>
    %224 = vector.shape_cast %216 : vector<8x8xf32> to vector<1x8x8xf32>
    %225 = vector.shape_cast %217 : vector<8x8xf32> to vector<1x8x8xf32>
    %226 = vector.shape_cast %218 : vector<8x8xf32> to vector<1x8x8xf32>
    %227 = tpu.concatenate %219, %220, %221, %222, %223, %224, %225, %226 in 0 : vector<1x8x8xf32>, vector<1x8x8xf32>, vector<1x8x8xf32>, vector<1x8x8xf32>, vector<1x8x8xf32>, vector<1x8x8xf32>, vector<1x8x8xf32>, vector<1x8x8xf32> -> vector<8x8x8xf32>
    %228 = vector.extract_strided_slice %193 {offsets = [0, 0], sizes = [8, 8], strides = [1, 1]} : vector<16x32xf32> to vector<8x8xf32>
    %229 = vector.extract_strided_slice %193 {offsets = [0, 8], sizes = [8, 8], strides = [1, 1]} : vector<16x32xf32> to vector<8x8xf32>
    %230 = vector.extract_strided_slice %193 {offsets = [0, 16], sizes = [8, 8], strides = [1, 1]} : vector<16x32xf32> to vector<8x8xf32>
    %231 = vector.extract_strided_slice %193 {offsets = [0, 24], sizes = [8, 8], strides = [1, 1]} : vector<16x32xf32> to vector<8x8xf32>
    %232 = vector.extract_strided_slice %193 {offsets = [8, 0], sizes = [8, 8], strides = [1, 1]} : vector<16x32xf32> to vector<8x8xf32>
    %233 = vector.extract_strided_slice %193 {offsets = [8, 8], sizes = [8, 8], strides = [1, 1]} : vector<16x32xf32> to vector<8x8xf32>
    %234 = vector.extract_strided_slice %193 {offsets = [8, 16], sizes = [8, 8], strides = [1, 1]} : vector<16x32xf32> to vector<8x8xf32>
    %235 = vector.extract_strided_slice %193 {offsets = [8, 24], sizes = [8, 8], strides = [1, 1]} : vector<16x32xf32> to vector<8x8xf32>
    %236 = vector.shape_cast %228 : vector<8x8xf32> to vector<1x8x8xf32>
    %237 = vector.shape_cast %229 : vector<8x8xf32> to vector<1x8x8xf32>
    %238 = vector.shape_cast %230 : vector<8x8xf32> to vector<1x8x8xf32>
    %239 = vector.shape_cast %231 : vector<8x8xf32> to vector<1x8x8xf32>
    %240 = vector.shape_cast %232 : vector<8x8xf32> to vector<1x8x8xf32>
    %241 = vector.shape_cast %233 : vector<8x8xf32> to vector<1x8x8xf32>
    %242 = vector.shape_cast %234 : vector<8x8xf32> to vector<1x8x8xf32>
    %243 = vector.shape_cast %235 : vector<8x8xf32> to vector<1x8x8xf32>
    %244 = tpu.concatenate %236, %237, %238, %239, %240, %241, %242, %243 in 0 : vector<1x8x8xf32>, vector<1x8x8xf32>, vector<1x8x8xf32>, vector<1x8x8xf32>, vector<1x8x8xf32>, vector<1x8x8xf32>, vector<1x8x8xf32>, vector<1x8x8xf32> -> vector<8x8x8xf32>
    "tpu.trace_start"() <{level = 10 : i32, message = "gqd,gdk->gqk"}> : () -> ()
    %cst_61 = arith.constant dense<0.000000e+00> : vector<8x8x8xf32>
    %245 = tpu.matmul %210, %227, %cst_61 {dimension_numbers = #tpu.dot_dimension_numbers<[2], [1], [1], [2], [0, 0, 0, 1, 1, 2], [0], [0]>} : vector<8x8x8xf32>, vector<8x8x8xf32>, vector<8x8x8xf32> -> vector<8x8x8xf32>
    "tpu.trace_stop"() : () -> ()
    %cst_62 = arith.constant dense<0xFF800000> : vector<8x8xf32>
    %246 = vector.multi_reduction <maximumf>, %245, %cst_62 [2] : vector<8x8x8xf32> to vector<8x8xf32>
    %247 = vector.shape_cast %246 : vector<8x8xf32> to vector<8x8x1xf32>
    %248 = vector.broadcast %247 : vector<8x8x1xf32> to vector<8x8x8xf32>
    %249 = arith.subf %245, %248 : vector<8x8x8xf32>
    %250 = math.exp %249 : vector<8x8x8xf32>
    %cst_63 = arith.constant dense<0.000000e+00> : vector<8x8xf32>
    %251 = vector.multi_reduction <add>, %250, %cst_63 [2] : vector<8x8x8xf32> to vector<8x8xf32>
    %252 = vector.shape_cast %251 : vector<8x8xf32> to vector<8x8x1xf32>
    %253 = tpu.reciprocal %252 : vector<8x8x1xf32> -> vector<8x8x1xf32>
    %254 = vector.broadcast %253 : vector<8x8x1xf32> to vector<8x8x8xf32>
    %255 = arith.mulf %250, %254 : vector<8x8x8xf32>
    "tpu.trace_start"() <{level = 10 : i32, message = "gqk,gkd->gqd"}> : () -> ()
    %cst_64 = arith.constant dense<0.000000e+00> : vector<8x8x8xf32>
    %256 = tpu.matmul %255, %244, %cst_64 {dimension_numbers = #tpu.dot_dimension_numbers<[2], [1], [1], [2], [0, 0, 0, 1, 1, 2], [0], [0]>} : vector<8x8x8xf32>, vector<8x8x8xf32>, vector<8x8x8xf32> -> vector<8x8x8xf32>
    "tpu.trace_stop"() : () -> ()
    %257 = vector.extract_strided_slice %256 {offsets = [0, 0, 0], sizes = [1, 8, 8], strides = [1, 1, 1]} : vector<8x8x8xf32> to vector<1x8x8xf32>
    %258 = vector.shape_cast %257 : vector<1x8x8xf32> to vector<8x8xf32>
    %259 = vector.extract_strided_slice %256 {offsets = [1, 0, 0], sizes = [1, 8, 8], strides = [1, 1, 1]} : vector<8x8x8xf32> to vector<1x8x8xf32>
    %260 = vector.shape_cast %259 : vector<1x8x8xf32> to vector<8x8xf32>
    %261 = vector.extract_strided_slice %256 {offsets = [2, 0, 0], sizes = [1, 8, 8], strides = [1, 1, 1]} : vector<8x8x8xf32> to vector<1x8x8xf32>
    %262 = vector.shape_cast %261 : vector<1x8x8xf32> to vector<8x8xf32>
    %263 = vector.extract_strided_slice %256 {offsets = [3, 0, 0], sizes = [1, 8, 8], strides = [1, 1, 1]} : vector<8x8x8xf32> to vector<1x8x8xf32>
    %264 = vector.shape_cast %263 : vector<1x8x8xf32> to vector<8x8xf32>
    %265 = tpu.concatenate %258, %260, %262, %264 in 1 : vector<8x8xf32>, vector<8x8xf32>, vector<8x8xf32>, vector<8x8xf32> -> vector<8x32xf32>
    %266 = vector.extract_strided_slice %256 {offsets = [4, 0, 0], sizes = [1, 8, 8], strides = [1, 1, 1]} : vector<8x8x8xf32> to vector<1x8x8xf32>
    %267 = vector.shape_cast %266 : vector<1x8x8xf32> to vector<8x8xf32>
    %268 = vector.extract_strided_slice %256 {offsets = [5, 0, 0], sizes = [1, 8, 8], strides = [1, 1, 1]} : vector<8x8x8xf32> to vector<1x8x8xf32>
    %269 = vector.shape_cast %268 : vector<1x8x8xf32> to vector<8x8xf32>
    %270 = vector.extract_strided_slice %256 {offsets = [6, 0, 0], sizes = [1, 8, 8], strides = [1, 1, 1]} : vector<8x8x8xf32> to vector<1x8x8xf32>
    %271 = vector.shape_cast %270 : vector<1x8x8xf32> to vector<8x8xf32>
    %272 = vector.extract_strided_slice %256 {offsets = [7, 0, 0], sizes = [1, 8, 8], strides = [1, 1, 1]} : vector<8x8x8xf32> to vector<1x8x8xf32>
    %273 = vector.shape_cast %272 : vector<1x8x8xf32> to vector<8x8xf32>
    %274 = tpu.concatenate %267, %269, %271, %273 in 1 : vector<8x8xf32>, vector<8x8xf32>, vector<8x8xf32>, vector<8x8xf32> -> vector<8x32xf32>
    %275 = tpu.concatenate %265, %274 in 0 : vector<8x32xf32>, vector<8x32xf32> -> vector<16x32xf32>
    %cst_65 = arith.constant dense<0.000000e+00> : vector<16x32xf32>
    %276 = tpu.matmul %275, %172, %cst_65 {dimension_numbers = #tpu.dot_dimension_numbers<[1], [0], [0], [1], [0, 0, 1, 1], [], []>} : vector<16x32xf32>, vector<32x32xf32>, vector<16x32xf32> -> vector<16x32xf32>
    %277 = vector.broadcast %181 : vector<1x32xf32> to vector<16x32xf32>
    %278 = arith.addf %276, %277 : vector<16x32xf32>
    %279 = arith.addf %166, %278 : vector<16x32xf32>
    %cst_66 = arith.constant dense<0.000000e+00> : vector<16xf32>
    %280 = vector.multi_reduction <add>, %279, %cst_66 [1] : vector<16x32xf32> to vector<16xf32>
    %281 = vector.shape_cast %280 : vector<16xf32> to vector<16x1xf32>
    %cst_67 = arith.constant 3.200000e+01 : f32
    %282 = vector.broadcast %cst_67 : f32 to vector<16x1xf32>
    %283 = arith.divf %281, %282 : vector<16x1xf32>
    %284 = vector.broadcast %283 : vector<16x1xf32> to vector<16x32xf32>
    %285 = arith.subf %279, %284 : vector<16x32xf32>
    %286 = arith.mulf %285, %285 : vector<16x32xf32>
    %cst_68 = arith.constant dense<0.000000e+00> : vector<16xf32>
    %287 = vector.multi_reduction <add>, %286, %cst_68 [1] : vector<16x32xf32> to vector<16xf32>
    %288 = vector.shape_cast %287 : vector<16xf32> to vector<16x1xf32>
    %cst_69 = arith.constant 3.200000e+01 : f32
    %289 = vector.broadcast %cst_69 : f32 to vector<16x1xf32>
    %290 = arith.divf %288, %289 : vector<16x1xf32>
    %291 = vector.broadcast %283 : vector<16x1xf32> to vector<16x32xf32>
    %292 = arith.subf %279, %291 : vector<16x32xf32>
    %cst_70 = arith.constant 9.99999974E-6 : f32
    %293 = vector.broadcast %cst_70 : f32 to vector<16x1xf32>
    %294 = arith.addf %290, %293 : vector<16x1xf32>
    %295 = math.rsqrt %294 : vector<16x1xf32>
    %296 = vector.broadcast %295 : vector<16x1xf32> to vector<16x32xf32>
    %297 = arith.mulf %292, %296 : vector<16x32xf32>
    %298 = vector.broadcast %183 : vector<1x32xf32> to vector<16x32xf32>
    %299 = arith.mulf %297, %298 : vector<16x32xf32>
    %300 = vector.broadcast %184 : vector<1x32xf32> to vector<16x32xf32>
    %301 = arith.addf %299, %300 : vector<16x32xf32>
    %cst_71 = arith.constant dense<0.000000e+00> : vector<16x64xf32>
    %302 = tpu.matmul %301, %174, %cst_71 {dimension_numbers = #tpu.dot_dimension_numbers<[1], [0], [0], [1], [0, 0, 1, 1], [], []>} : vector<16x32xf32>, vector<32x64xf32>, vector<16x64xf32> -> vector<16x64xf32>
    %303 = vector.broadcast %176 : vector<1x64xf32> to vector<16x64xf32>
    %304 = arith.addf %302, %303 : vector<16x64xf32>
    %cst_72 = arith.constant 0.000000e+00 : f32
    %305 = vector.broadcast %cst_72 : f32 to vector<16x64xf32>
    %306 = arith.maximumf %304, %305 : vector<16x64xf32>
    %cst_73 = arith.constant dense<0.000000e+00> : vector<16x32xf32>
    %307 = tpu.matmul %306, %178, %cst_73 {dimension_numbers = #tpu.dot_dimension_numbers<[1], [0], [0], [1], [0, 0, 1, 1], [], []>} : vector<16x64xf32>, vector<64x32xf32>, vector<16x32xf32> -> vector<16x32xf32>
    %308 = vector.broadcast %182 : vector<1x32xf32> to vector<16x32xf32>
    %309 = arith.addf %307, %308 : vector<16x32xf32>
    %310 = arith.addf %301, %309 : vector<16x32xf32>
    %cst_74 = arith.constant dense<0.000000e+00> : vector<16xf32>
    %311 = vector.multi_reduction <add>, %310, %cst_74 [1] : vector<16x32xf32> to vector<16xf32>
    %312 = vector.shape_cast %311 : vector<16xf32> to vector<16x1xf32>
    %cst_75 = arith.constant 3.200000e+01 : f32
    %313 = vector.broadcast %cst_75 : f32 to vector<16x1xf32>
    %314 = arith.divf %312, %313 : vector<16x1xf32>
    %315 = vector.broadcast %314 : vector<16x1xf32> to vector<16x32xf32>
    %316 = arith.subf %310, %315 : vector<16x32xf32>
    %317 = arith.mulf %316, %316 : vector<16x32xf32>
    %cst_76 = arith.constant dense<0.000000e+00> : vector<16xf32>
    %318 = vector.multi_reduction <add>, %317, %cst_76 [1] : vector<16x32xf32> to vector<16xf32>
    %319 = vector.shape_cast %318 : vector<16xf32> to vector<16x1xf32>
    %cst_77 = arith.constant 3.200000e+01 : f32
    %320 = vector.broadcast %cst_77 : f32 to vector<16x1xf32>
    %321 = arith.divf %319, %320 : vector<16x1xf32>
    %322 = vector.broadcast %314 : vector<16x1xf32> to vector<16x32xf32>
    %323 = arith.subf %310, %322 : vector<16x32xf32>
    %cst_78 = arith.constant 9.99999974E-6 : f32
    %324 = vector.broadcast %cst_78 : f32 to vector<16x1xf32>
    %325 = arith.addf %321, %324 : vector<16x1xf32>
    %326 = math.rsqrt %325 : vector<16x1xf32>
    %327 = vector.broadcast %326 : vector<16x1xf32> to vector<16x32xf32>
    %328 = arith.mulf %323, %327 : vector<16x32xf32>
    %329 = vector.broadcast %185 : vector<1x32xf32> to vector<16x32xf32>
    %330 = arith.mulf %328, %329 : vector<16x32xf32>
    %331 = vector.broadcast %186 : vector<1x32xf32> to vector<16x32xf32>
    %332 = arith.addf %330, %331 : vector<16x32xf32>
    %c0_79 = arith.constant 0 : index
    %c0_80 = arith.constant 0 : index
    %333 = vector.load %arg8[%c0_79, %c0_80] : memref<2x32xf32, #tpu.memory_space<vmem>>, vector<2x32xf32>
    %334 = vector.extract_strided_slice %333 {offsets = [0, 0], sizes = [1, 32], strides = [1, 1]} : vector<2x32xf32> to vector<1x32xf32>
    %335 = vector.extract_strided_slice %333 {offsets = [1, 0], sizes = [1, 32], strides = [1, 1]} : vector<2x32xf32> to vector<1x32xf32>
    %cst_81 = arith.constant dense<0.000000e+00> : vector<16xf32>
    %336 = vector.multi_reduction <add>, %332, %cst_81 [1] : vector<16x32xf32> to vector<16xf32>
    %337 = vector.shape_cast %336 : vector<16xf32> to vector<16x1xf32>
    %cst_82 = arith.constant 3.200000e+01 : f32
    %338 = vector.broadcast %cst_82 : f32 to vector<16x1xf32>
    %339 = arith.divf %337, %338 : vector<16x1xf32>
    %340 = vector.broadcast %339 : vector<16x1xf32> to vector<16x32xf32>
    %341 = arith.subf %332, %340 : vector<16x32xf32>
    %342 = arith.mulf %341, %341 : vector<16x32xf32>
    %cst_83 = arith.constant dense<0.000000e+00> : vector<16xf32>
    %343 = vector.multi_reduction <add>, %342, %cst_83 [1] : vector<16x32xf32> to vector<16xf32>
    %344 = vector.shape_cast %343 : vector<16xf32> to vector<16x1xf32>
    %cst_84 = arith.constant 3.200000e+01 : f32
    %345 = vector.broadcast %cst_84 : f32 to vector<16x1xf32>
    %346 = arith.divf %344, %345 : vector<16x1xf32>
    %347 = vector.broadcast %339 : vector<16x1xf32> to vector<16x32xf32>
    %348 = arith.subf %332, %347 : vector<16x32xf32>
    %cst_85 = arith.constant 9.99999974E-6 : f32
    %349 = vector.broadcast %cst_85 : f32 to vector<16x1xf32>
    %350 = arith.addf %346, %349 : vector<16x1xf32>
    %351 = math.rsqrt %350 : vector<16x1xf32>
    %352 = vector.broadcast %351 : vector<16x1xf32> to vector<16x32xf32>
    %353 = arith.mulf %348, %352 : vector<16x32xf32>
    %354 = vector.broadcast %334 : vector<1x32xf32> to vector<16x32xf32>
    %355 = arith.mulf %353, %354 : vector<16x32xf32>
    %356 = vector.broadcast %335 : vector<1x32xf32> to vector<16x32xf32>
    %357 = arith.addf %355, %356 : vector<16x32xf32>
    %c0_86 = arith.constant 0 : index
    %c0_87 = arith.constant 0 : index
    %358 = vector.load %arg9[%c0_86, %c0_87] : memref<16x32xf32, #tpu.memory_space<vmem>>, vector<16x32xf32>
    tpu.vector_store %arg9[%c0_86, %c0_87], %357 {strides = array<i32>} : memref<16x32xf32, #tpu.memory_space<vmem>>, vector<16x32xf32>,
    return
  }
}

</mosaic_0001>

<bundles_post_ra>
// kernel: tpu_custom_call.1
= control target key start
LH: loop header
LB: loop body
LE: loop exit
PB: predicated region body
PF: predicated region fallthrough
CT: control target
= control target key end

     0   :  { %s2832_s0 = inlined_call_operand.vmem [shape: f32[16,32], index: 0, kind: input, shape index: {}]   ;;  %s2833_s1 = inlined_call_operand.vmem [shape: f32[2,32,96], index: 1, kind: input, shape index: {}]   ;;  %s2834_s2 = inlined_call_operand.vmem [shape: f32[2,1,96], index: 2, kind: input, shape index: {}]   ;;  %s2835_s3 = inlined_call_operand.vmem [shape: f32[2,32,32], index: 3, kind: input, shape index: {}]   ;;  %s2836_s4 = inlined_call_operand.vmem [shape: f32[2,32,64], index: 4, kind: input, shape index: {}]   ;;  %s2837_s5 = inlined_call_operand.vmem [shape: f32[2,1,64], index: 5, kind: input, shape index: {}]   ;;  %s2838_s6 = inlined_call_operand.vmem [shape: f32[2,64,32], index: 6, kind: input, shape index: {}]   ;;  %s2839_s7 = inlined_call_operand.vmem [shape: f32[2,6,32], index: 7, kind: input, shape index: {}]   ;;  %s2840_s8 = inlined_call_operand.vmem [shape: f32[2,32], index: 8, kind: input, shape index: {}]   ;;  %s2841_s9 = inlined_call_operand.hbm [shape: f32[16,32], index: 9, kind: output, shape index: {}]  }
   0x1   :  { %v38_v0 = vld [vmem:[%s2833_s1 + $0x18] sm:$0xff]  ;;  %v37_v1 = vld [vmem:[%s2833_s1 + $0x10] sm:$0xff]  ;;  %v36_v2 = vld [vmem:[%s2833_s1 + $0x8] sm:$0xff] }
   0x2   :  { %80 = vmatpush.msra.mxu0 %v38_v0 }
   0x4   :  { %81 = vmatpush.msra.mxu0 %v37_v1 }
   0x5   :  { %14 = vsyncpa [#allocation3], 0  ;;  %v35_v3 = vld [vmem:[%s2833_s1] sm:$0xff]  ;;  %vm61_vm0 = vcmask 261120   ;;  %v2311_v5 = vld [vmem:[%s2832_s0 + $0x8] sm:$0xff]  ;;  %s2228_s23 = smov 112  }
   0x6   :  { %82 = vmatpush.msra.mxu0 %v36_v2  ;;  %v2304_v4 = vld [vmem:[%s2832_s0] sm:$0xff]  ;;  %s2229_s24 = smov 120   ;;  %s2230_s0 = smov 104   ;;  %vm159_vm1 = vcmask 64512  }
   0x7   :  { %v2112_v6 = vld [vmem:[%s2834_s2] ss:$0 sm:$0xff]  ;;  %s2231_s25 = smov 96   ;;  %s2232_s26 = smov 64  }
   0x8   :  { %83 = vmatpush.msra.mxu0 %v35_v3  ;;  %s2233_s27 = smov 8   ;;  %s2234_s28 = smov 16  }
   0x9   :  { %1979 = vmatmul.msk.f32.vlgmr.msra.gmra.mxu0 %vm61_vm0, %v2304_v4  ;;  %s2235_s29 = smov 24   ;;  %s1967_s15 = sshll.u32 %s2841_s9, 4  ;;  %s1968_s15 = int_to_ptr.hbm [resolvable:$true] %s1967_s15 }
   0xa   :  { %s2238_s16 = smov 128  }
  0x11   :  { %1980 = vmatmul.msk.f32.gmra.mxu0 %vm61_vm0, %v2311_v5 }
  0x86   :  { %v85_v7 = vpop.f32.mrf.mxu0 }
  0x87   :  { %v2318_v8 = vadd.f32 %v2112_v6, %v85_v7 }
  0x89   :  { %133 = vrot.lane.b32.xlu2 %v2318_v8, %s2228_s23  ;;  %131 = vrot.lane.b32.xlu1 %v2318_v8, %s2229_s24 }
  0x8e   :  { %v88_v9 = vpop.f32.mrf.mxu0 }
  0x8f   :  { %v2324_v10 = vadd.f32 %v2112_v6, %v88_v9 }
  0x91   :  { %135 = vrot.lane.b32.xlu2 %v2318_v8, %s2230_s0  ;;  %v2062_v11 = vpack.i.bf16 %v2324_v10, %v2318_v8 }
  0x93   :  { %2063 = vrot.lane.b32.xlu0 %v2062_v11, %s2231_s25 }
  0x99   :  { %141 = vrot.lane.b32.xlu2 %v2324_v10, %s2230_s0 }
  0xe3   :  { %v2337_v18 = vpop.permute.xlu2 %133 }
  0xeb   :  { %v136_v21 = vpop.permute.xlu2 %135 }
  0xf3   :  { %v2348_v23 = vpop.permute.xlu2 %141 }
  0xfb   :  { %v132_v17 = vpop.permute.xlu1 %131 }
  0xfc   :  { %v2072_v36 = vpack.i.bf16 %v132_v17, %v136_v21 }
 0x105   :  { %v2064_v12 = vpop.permute.xlu0 %2063 }
 0x106   :  { %v2065_v13 = vunpack.i.l.bf16 %v2064_v12  ;;  %v2066_v14 = vunpack.i.h.bf16 %v2064_v12 }
 0x108   :  { %99 = vxpose.xlu0.b32.start [1/2] (short) (narrow) %v2065_v13, 32 }
 0x110   :  { %100 = vxpose.xlu0.b32.end [2/2] (short) (narrow) %v2066_v14, 32 }
 0x1ac   :  { %v115_v15 = vpop.trf.xlu0 }
 0x1ad   :  { %177 = vmatpush.msra.mxu1 %v115_v15  ;;  %144 = vrot.lane.b32.xlu1 %v115_v15, %s2229_s24 }
 0x1ae   :  { %1981 = vmatmul.msk.f32.vlgmr.msra.gmra.mxu1 %vm159_vm1, %v2318_v8 }
 0x1b4   :  { %v116_v16 = vpop.trf.xlu0 }
 0x1b5   :  { %199 = vmatpush.msra.mxu3 %v116_v16 }
 0x1b6   :  { %1982 = vmatmul.msk.f32.vlgmr.msra.gmra.mxu3 %vm159_vm1, %v132_v17 }
 0x1bc   :  { %v117_v19 = vpop.trf.xlu0 }
 0x1bd   :  { %221 = vmatpush.msrb.mxu3 %v117_v19  ;;  %152 = vrot.lane.b32.xlu2 %v117_v19, %s2229_s24 }
 0x1be   :  { %1983 = vmatmul.msk.f32.vlgmr.msrb.gmra.mxu3 %vm159_vm1, %v2337_v18 }
 0x1c4   :  { %v118_v20 = vpop.trf.xlu0 }
 0x1c5   :  { %v2067_v22 = vpack.i.bf16 %v116_v16, %v118_v20  ;;  %243 = vmatpush.msrb.mxu1 %v118_v20 }
 0x1c6   :  { %1984 = vmatmul.msk.f32.vlgmr.msrb.gmra.mxu1 %vm159_vm1, %v136_v21 }
 0x1c7   :  { %2068 = vrot.lane.b32.xlu1 %v2067_v22, %s2229_s24 }
 0x1cf   :  { %137 = vrot.lane.b32.xlu1 %v2324_v10, %s2229_s24 }
 0x1d7   :  { %139 = vrot.lane.b32.xlu1 %v2324_v10, %s2228_s23 }
 0x217   :  { %v153_v24 = vpop.permute.xlu2 %152 }
 0x218   :  { %309 = vmatpush.msra.mxu1 %v153_v24 }
 0x21f   :  { %v145_v25 = vpop.permute.xlu1 %144 }
 0x220   :  { %265 = vmatpush.msra.mxu2 %v145_v25 }
 0x221   :  { %1985 = vmatmul.msk.f32.vlgmr.msra.gmra.mxu2 %vm159_vm1, %v2324_v10 }
 0x22b   :  { %v2352_v26 = vpop.f32.mrf.mxu1 }
 0x22c   :  { %v336_v27 = vsel %vm159_vm1, %v2352_v26, -inf }
 0x22d   :  { %337 = vmax.xlane.f32.xlu2 %v336_v27 }
 0x239   :  { %v201_v28 = vpop.f32.mrf.mxu3  ;;  %v2069_v29 = vpop.permute.xlu1 %2068 }
 0x23a   :  { %v2071_v30 = vunpack.i.h.bf16 %v2069_v29  ;;  %v339_v31 = vsel %vm159_vm1, %v201_v28, -inf  ;;  %v2070_v32 = vunpack.i.l.bf16 %v2069_v29 }
 0x23b   :  { %340 = vmax.xlane.f32.xlu1 %v339_v31 }
 0x23c   :  { %287 = vmatpush.msra.mxu3 %v2071_v30  ;;  %331 = vmatpush.msrb.mxu2 %v2070_v32 }
 0x23d   :  { %1988 = vmatmul.msk.f32.vlgmr.msrb.gmra.mxu2 %vm159_vm1, %v2348_v23 }
 0x241   :  { %v223_v33 = vpop.f32.mrf.mxu3  ;;  %v2359_v34 = vpop.permute.xlu1 %137 }
 0x242   :  { %1986 = vmatmul.msk.f32.vlgmr.msra.gmra.mxu3 %vm159_vm1, %v2359_v34  ;;  %v342_v35 = vsel %vm159_vm1, %v223_v33, -inf }
 0x243   :  { %343 = vmax.xlane.f32.xlu0 %v342_v35  ;;  %v245_v38 = vpop.f32.mrf.mxu1 }
 0x244   :  { %v345_v39 = vsel %vm159_vm1, %v245_v38, -inf }
 0x245   :  { %2073 = vrot.lane.b32.xlu2 %v2072_v36, %s2232_s26 }
 0x249   :  { %v2365_v37 = vpop.permute.xlu1 %139 }
 0x24a   :  { %1987 = vmatmul.msk.f32.vlgmr.msra.gmra.mxu1 %vm159_vm1, %v2365_v37 }
 0x257   :  { %528 = vrot.lane.b32.xlu0 %v2318_v8, %s2232_s26 }
 0x26e   :  { %346 = vmax.xlane.f32.xlu2 %v345_v39 }
 0x2a0   :  { %v2372_v40 = vpop.xlane.xlu2 %337 }
 0x2a4   :  { %v2374_v41 = vpop.f32.mrf.mxu2 }
 0x2a5   :  { %v348_v42 = vsel %vm159_vm1, %v2374_v41, -inf }
 0x2a6   :  { %349 = vmax.xlane.f32.xlu1 %v348_v42 }
 0x2a8   :  { %v2074_v43 = vpop.permute.xlu2 %2073 }
 0x2a9   :  { %v2075_v44 = vunpack.i.l.bf16 %v2074_v43  ;;  %v2076_v45 = vunpack.i.h.bf16 %v2074_v43  ;;  %v2082_v43 = vpack.i.bf16 %v2365_v37, %v2359_v34 }
 0x2ab   :  { %575 = vmatpush.msrb.mxu0 %v2076_v45  ;;  %627 = vmatpush.msra.mxu2 %v2075_v44 }
 0x2ae   :  { %v341_v46 = vpop.xlane.xlu1 %340 }
 0x2af   :  { %v361_v47 = vsub.f32 %v201_v28, %v341_v46  ;;  %v2077_v46 = vpack.i.bf16 %v2348_v23, %v2337_v18 }
 0x2b1   :  { %v370_v49 = vmul.f32 1.442695, %v361_v47 }
 0x2b3   :  { %2116 = vpow2.f32 %v370_v49 }
 0x2b6   :  { %v344_v48 = vpop.xlane.xlu0 %343 }
 0x2b7   :  { %v362_v50 = vsub.f32 %v223_v33, %v344_v48 }
 0x2b9   :  { %v372_v55 = vmul.f32 1.442695, %v362_v50  ;;  %v2117_v58 = vpop.eup %2116 }
 0x2ba   :  { %v387_v60 = vsel %vm159_vm1, %v2117_v58, 0.0 }
 0x2bb   :  { %2118 = vpow2.f32 %v372_v55  ;;  %v360_v55 = vsub.f32 %v2352_v26, %v2372_v40 }
 0x2c0   :  { %v333_v57 = vpop.f32.mrf.mxu2 }
 0x2c1   :  { %v357_v59 = vsel %vm159_vm1, %v333_v57, -inf  ;;  %v2382_v61 = vpop.eup %2118 }
 0x2c2   :  { %v390_v62 = vsel %vm159_vm1, %v2382_v61, 0.0 }
 0x2c5   :  { %v289_v51 = vpop.f32.mrf.mxu3 }
 0x2c6   :  { %v351_v52 = vsel %vm159_vm1, %v289_v51, -inf }
 0x2c7   :  { %v311_v53 = vpop.f32.mrf.mxu1  ;;  %352 = vmax.xlane.f32.xlu2 %v351_v52 }
 0x2c8   :  { %v354_v54 = vsel %vm159_vm1, %v311_v53, -inf }
 0x2c9   :  { %v529_v56 = vpop.permute.xlu0 %528  ;;  %355 = vmax.xlane.f32.xlu1 %v354_v54 }
 0x2ca   :  { %549 = vmatpush.msrb.mxu3 %v529_v56 }
 0x2cf   :  { %358 = vmax.xlane.f32.xlu2 %v357_v59 }
 0x2d1   :  { %388 = vadd.xlane.f32.xlu1 %v387_v60 }
 0x2d7   :  { %391 = vadd.xlane.f32.xlu2 %v390_v62 }
 0x2e1   :  { %v347_v63 = vpop.xlane.xlu2 %346 }
 0x2e2   :  { %v363_v0 = vsub.f32 %v245_v38, %v347_v63 }
 0x2e4   :  { %v374_v1 = vmul.f32 1.442695, %v363_v0 }
 0x2e6   :  { %2120 = vpow2.f32 %v374_v1 }
 0x2ec   :  { %v2386_v2 = vpop.eup %2120 }
 0x2ed   :  { %v393_v3 = vsel %vm159_vm1, %v2386_v2, 0.0 }
 0x2ee   :  { %394 = vadd.xlane.f32.xlu2 %v393_v3 }
 0x319   :  { %v2390_v6 = vpop.xlane.xlu1 %349 }
 0x31a   :  { %v364_v18 = vsub.f32 %v2374_v41, %v2390_v6 }
 0x31c   :  { %v376_v23 = vmul.f32 1.442695, %v364_v18 }
 0x33a   :  { %v353_v7 = vpop.xlane.xlu2 %352 }
 0x33b   :  { %v365_v8 = vsub.f32 %v289_v51, %v353_v7 }
 0x33c   :  { %v356_v9 = vpop.xlane.xlu1 %355 }
 0x33d   :  { %v378_v11 = vmul.f32 1.442695, %v365_v8  ;;  %v366_v12 = vsub.f32 %v311_v53, %v356_v9 }
 0x33f   :  { %2122 = vpow2.f32 %v378_v11  ;;  %v380_v13 = vmul.f32 1.442695, %v366_v12 }
 0x341   :  { %2124 = vpow2.f32 %v380_v13 }
 0x342   :  { %v359_v14 = vpop.xlane.xlu2 %358 }
 0x343   :  { %v367_v15 = vsub.f32 %v333_v57, %v359_v14  ;;  %v368_v57 = vmul.f32 1.442695, %v360_v55 }
 0x344   :  { %v389_v16 = vpop.xlane.xlu1 %388 }
 0x345   :  { %v2392_v17 = vpop.eup %2122  ;;  %v382_v19 = vmul.f32 1.442695, %v367_v15  ;;  %2126 = vrcp.f32 %v389_v16  ;;  %v433_v29 = vand.u32 2147483648, %v389_v16  ;;  %v431_v31 = vand.u32 2147483647, %v389_v16 }
 0x346   :  { %v399_v20 = vsel %vm159_vm1, %v2392_v17, 0.0  ;;  %vm427_vm3 = vweird.f32 %v389_v16 }
 0x347   :  { %v2396_v21 = vpop.eup %2124  ;;  %2128 = vpow2.f32 %v382_v19  ;;  %400 = vadd.xlane.f32.xlu2 %v399_v20  ;;  %v434_v35 = vor.u32 1.1754944e-38, %v433_v29  ;;  %vm432_vm5 = vcmp.eq.f32.partialorder %v431_v31, 8.507059e+37 }
 0x348   :  { %v402_v22 = vsel %vm159_vm1, %v2396_v21, 0.0 }
 0x349   :  { %403 = vadd.xlane.f32.xlu1 %v402_v22 }
 0x34a   :  { %v2405_v42 = vpop.xlane.xlu2 %391 }
 0x34b   :  { %v2127_v24 = vpop.eup %2126 }
 0x34c   :  { %v423_v25 = vmul.f32 %v2127_v24, %v389_v16  ;;  %vm428_vm2 = vweird.f32 %v2127_v24 }
 0x34d   :  { %v2400_v27 = vpop.eup %2128  ;;  %vm429_vm4 = vmor %vm427_vm3, %vm428_vm2  ;;  %vm441_vm2 = vweird.f32 %v2405_v42 }
 0x34e   :  { %v424_v28 = vsub.f32 1.0, %v423_v25  ;;  %v405_v32 = vsel %vm159_vm1, %v2400_v27, 0.0 }
 0x350   :  { %v425_v30 = vmul.f32 %v2127_v24, %v424_v28 }
 0x351   :  { %406 = vadd.xlane.f32.xlu1 %v405_v32  ;;  %v447_v32 = vand.u32 2147483648, %v2405_v42 }
 0x352   :  { %v426_v33 = vadd.f32 %v2127_v24, %v425_v30 }
 0x354   :  { %v430_v36 = vsel %vm429_vm4, %v2127_v24, %v426_v33 }
 0x355   :  { %v435_v38 = vsel %vm432_vm5, %v434_v35, %v430_v36 }
 0x356   :  { %v521_v39 = vmul.f32 %v2117_v58, %v435_v38 }
 0x358   :  { %1990 = vmatmul.msk.f32.vlgmr.msrb.gmra.mxu0 %vm159_vm1, %v521_v39 }
 0x35f   :  { %2083 = vrot.lane.b32.xlu2 %v2082_v43, %s2232_s26 }
 0x361   :  { %v395_v44 = vpop.xlane.xlu2 %394 }
 0x362   :  { %2130 = vrcp.f32 %v395_v44  ;;  %v461_v49 = vand.u32 2147483648, %v395_v44  ;;  %v459_v51 = vand.u32 2147483647, %v395_v44  ;;  %vm455_vm7 = vweird.f32 %v395_v44 }
 0x363   :  { %2132 = vpow2.f32 %v376_v23 }
 0x364   :  { %v462_v34 = vor.u32 1.1754944e-38, %v461_v49  ;;  %vm460_vm9 = vcmp.eq.f32.partialorder %v459_v51, 8.507059e+37  ;;  %2134 = vpow2.f32 %v368_v57 }
 0x368   :  { %v2131_v45 = vpop.eup %2130 }
 0x369   :  { %v451_v47 = vmul.f32 %v2131_v45, %v395_v44  ;;  %vm456_vm6 = vweird.f32 %v2131_v45  ;;  %v2419_v56 = vpop.eup %2132  ;;  %v448_v44 = vor.u32 1.1754944e-38, %v447_v32 }
 0x36a   :  { %2078 = vrot.lane.b32.xlu1 %v2077_v46, %s2232_s26  ;;  %vm457_vm8 = vmor %vm455_vm7, %vm456_vm6  ;;  %v396_v58 = vsel %vm159_vm1, %v2419_v56, 0.0  ;;  %v2423_v59 = vpop.eup %2134 }
 0x36b   :  { %v452_v48 = vsub.f32 1.0, %v451_v47  ;;  %v384_v60 = vsel %vm159_vm1, %v2423_v59, 0.0 }
 0x36d   :  { %v453_v50 = vmul.f32 %v2131_v45, %v452_v48 }
 0x36f   :  { %v454_v52 = vadd.f32 %v2131_v45, %v453_v50 }
 0x371   :  { %v458_v37 = vsel %vm457_vm8, %v2131_v45, %v454_v52 }
 0x372   :  { %v463_v53 = vsel %vm460_vm9, %v462_v34, %v458_v37 }
 0x373   :  { %v523_v54 = vmul.f32 %v2386_v2, %v463_v53 }
 0x375   :  { %1992 = vmatmul.msk.f32.vlgmr.msra.gmra.mxu2 %vm159_vm1, %v523_v54 }
 0x388   :  { %397 = vadd.xlane.f32.xlu2 %v396_v58 }
 0x394   :  { %385 = vadd.xlane.f32.xlu1 %v384_v60 }
 0x3ad   :  { %632 = vrot.lane.b32.xlu1 %v2324_v10, %s2232_s26 }
 0x3ba   :  { %v401_v41 = vpop.xlane.xlu2 %400 }
 0x3bb   :  { %2136 = vrcp.f32 %v401_v41  ;;  %v489_v6 = vand.u32 2147483648, %v401_v41  ;;  %v487_v10 = vand.u32 2147483647, %v401_v41  ;;  %vm483_vm11 = vweird.f32 %v401_v41 }
 0x3bc   :  { %v2429_v26 = vpop.xlane.xlu1 %403  ;;  %2138 = vrcp.f32 %v2405_v42 }
 0x3bd   :  { %v490_v11 = vor.u32 1.1754944e-38, %v489_v6  ;;  %vm488_vm13 = vcmp.eq.f32.partialorder %v487_v10, 8.507059e+37  ;;  %vm497_vm9 = vweird.f32 %v2429_v26  ;;  %v501_v52 = vand.u32 2147483647, %v2429_v26 }
 0x3c1   :  { %v2137_v40 = vpop.eup %2136 }
 0x3c2   :  { %v479_v62 = vmul.f32 %v2137_v40, %v401_v41  ;;  %v2432_v63 = vpop.permute.xlu2 %2083  ;;  %v2139_v3 = vpop.eup %2138  ;;  %vm484_vm10 = vweird.f32 %v2137_v40 }
 0x3c3   :  { %v2085_v0 = vunpack.i.l.bf16 %v2432_v63  ;;  %v437_v8 = vmul.f32 %v2139_v3, %v2405_v42  ;;  %vm485_vm12 = vmor %vm483_vm11, %vm484_vm10  ;;  %vm442_vm14 = vweird.f32 %v2139_v3  ;;  %v2086_v53 = vunpack.i.h.bf16 %v2432_v63 }
 0x3c4   :  { %v480_v1 = vsub.f32 1.0, %v479_v62  ;;  %v407_v2 = vpop.xlane.xlu1 %406  ;;  %vm443_vm3 = vmor %vm441_vm2, %vm442_vm14  ;;  %vm502_vm11 = vcmp.eq.f32.partialorder %v501_v52, 8.507059e+37 }
 0x3c5   :  { %2140 = vrcp.f32 %v407_v2  ;;  %679 = vmatpush.msra.mxu0 %v2085_v0  ;;  %v438_v15 = vsub.f32 1.0, %v437_v8  ;;  %v517_v33 = vand.u32 2147483648, %v407_v2  ;;  %vm511_vm4 = vweird.f32 %v407_v2 }
 0x3c6   :  { %v481_v7 = vmul.f32 %v2137_v40, %v480_v1  ;;  %2142 = vrcp.f32 %v2429_v26  ;;  %v515_v36 = vand.u32 2147483647, %v407_v2 }
 0x3c7   :  { %v439_v24 = vmul.f32 %v2139_v3, %v438_v15  ;;  %v518_v45 = vor.u32 1.1754944e-38, %v517_v33 }
 0x3c8   :  { %v482_v9 = vadd.f32 %v2137_v40, %v481_v7  ;;  %vm516_vm7 = vcmp.eq.f32.partialorder %v515_v36, 8.507059e+37 }
 0x3c9   :  { %v440_v29 = vadd.f32 %v2139_v3, %v439_v24  ;;  %v42_v24 = vld [vmem:[%s2835_s3 + $0x10] sm:$0xff] }
 0x3ca   :  { %v486_v12 = vsel %vm485_vm12, %v2137_v40, %v482_v9 }
 0x3cb   :  { %v2141_v13 = vpop.eup %2140  ;;  %v491_v14 = vsel %vm488_vm13, %v490_v11, %v486_v12  ;;  %v444_v38 = vsel %vm443_vm3, %v2139_v3, %v440_v29 }
 0x3cc   :  { %v507_v16 = vmul.f32 %v2141_v13, %v407_v2  ;;  %v525_v19 = vmul.f32 %v2392_v17, %v491_v14  ;;  %v2143_v20 = vpop.eup %2142  ;;  %vm512_vm15 = vweird.f32 %v2141_v13  ;;  %v445_v17 = vand.u32 2147483647, %v2405_v42 }
 0x3cd   :  { %v493_v25 = vmul.f32 %v2143_v20, %v2429_v26  ;;  %vm513_vm5 = vmor %vm511_vm4, %vm512_vm15  ;;  %vm498_vm8 = vweird.f32 %v2143_v20  ;;  %v503_v42 = vand.u32 2147483648, %v2429_v26 }
 0x3ce   :  { %v508_v22 = vsub.f32 1.0, %v507_v16  ;;  %1994 = vmatmul.msk.f32.vlgmr.msra.gmra.mxu0 %vm159_vm1, %v525_v19  ;;  %vm446_vm6 = vcmp.eq.f32.partialorder %v445_v17, 8.507059e+37  ;;  %vm499_vm10 = vmor %vm497_vm9, %vm498_vm8 }
 0x3cf   :  { %v494_v30 = vsub.f32 1.0, %v493_v25  ;;  %v449_v46 = vsel %vm446_vm6, %v448_v44, %v444_v38  ;;  %v504_v18 = vor.u32 1.1754944e-38, %v503_v42  ;;  %v41_v25 = vld [vmem:[%s2835_s3 + $0x8] sm:$0xff]  ;;  %vm749_vm6 = vcmask 130048  }
 0x3d0   :  { %v509_v28 = vmul.f32 %v2141_v13, %v508_v22  ;;  %v522_v34 = vmul.f32 %v2382_v61, %v449_v46 }
 0x3d1   :  { %v495_v39 = vmul.f32 %v2143_v20, %v494_v30 }
 0x3d2   :  { %v510_v31 = vadd.f32 %v2141_v13, %v509_v28  ;;  %v40_v28 = vld [vmem:[%s2835_s3] sm:$0xff] }
 0x3d3   :  { %v496_v48 = vadd.f32 %v2143_v20, %v495_v39 }
 0x3d4   :  { %v514_v43 = vsel %vm513_vm5, %v2141_v13, %v510_v31 }
 0x3d5   :  { %v577_v35 = vpop.f32.mrf.mxu0  ;;  %v519_v47 = vsel %vm516_vm7, %v518_v45, %v514_v43  ;;  %v500_v54 = vsel %vm499_vm10, %v2143_v20, %v496_v48  ;;  %vm751_vm7 = vcmask 195584  }
 0x3d6   :  { %737 = vrot.lane.b32.xlu2 %v577_v35, %s2233_s27  ;;  %v527_v37 = vmul.f32 %v2400_v27, %v519_v47  ;;  %v505_v23 = vsel %vm502_vm11, %v504_v18, %v500_v54  ;;  %v2486_v47 = vld [vmem:[%s2839_s7] sm:$0x3f]  ;;  %v2236_v54 = vmov 32.0  }
 0x3d7   :  { %v526_v55 = vmul.f32 %v2396_v21, %v505_v23  ;;  %v768_v48 = vperm.slane %v2486_v47, 0 }
 0x3dc   :  { %v2079_v49 = vpop.permute.xlu1 %2078 }
 0x3dd   :  { %v2081_v50 = vunpack.i.h.bf16 %v2079_v49  ;;  %v2080_v51 = vunpack.i.l.bf16 %v2079_v49 }
 0x3df   :  { %601 = vmatpush.msrb.mxu1 %v2080_v51  ;;  %731 = vmatpush.msrb.mxu2 %v2081_v50 }
 0x3e0   :  { %1991 = vmatmul.msk.f32.vlgmr.msrb.gmra.mxu1 %vm159_vm1, %v522_v34  ;;  %1996 = vmatmul.msk.f32.vlgmr.msrb.gmra.mxu2 %vm159_vm1, %v527_v37 }
 0x3e1   :  { %705 = vmatpush.msra.mxu1 %v2086_v53 }
 0x3e8   :  { %1995 = vmatmul.msk.f32.vlgmr.msra.gmra.mxu1 %vm159_vm1, %v526_v55 }
 0x3f8   :  { %v629_v19 = vpop.f32.mrf.mxu2 }
 0x3fb   :  { %v398_v61 = vpop.xlane.xlu2 %397 }
 0x3fc   :  { %2144 = vrcp.f32 %v398_v61  ;;  %v475_v7 = vand.u32 2147483648, %v398_v61  ;;  %vm469_vm3 = vweird.f32 %v398_v61  ;;  %v473_v8 = vand.u32 2147483647, %v398_v61 }
 0x3fe   :  { %v476_v12 = vor.u32 1.1754944e-38, %v475_v7  ;;  %vm474_vm5 = vcmp.eq.f32.partialorder %v473_v8, 8.507059e+37  ;;  %v56_v8 = vld [vmem:[%s2838_s6 + $0x38] sm:$0xff] }
 0x3ff   :  { %907 = vmatpush.msrb.mxu1 %v56_v8  ;;  %v2003_v8 = vld [vmem:[%s2833_s1 + $0x20] sm:$0xff] }
 0x402   :  { %v2145_v57 = vpop.eup %2144 }
 0x403   :  { %v465_v58 = vmul.f32 %v2145_v57, %v398_v61  ;;  %vm470_vm15 = vweird.f32 %v2145_v57 }
 0x404   :  { %vm471_vm4 = vmor %vm469_vm3, %vm470_vm15  ;;  %vm892_vm15 = vcmask 523264  }
 0x405   :  { %v466_v41 = vsub.f32 1.0, %v465_v58 }
 0x407   :  { %v386_v27 = vpop.xlane.xlu1 %385  ;;  %v467_v63 = vmul.f32 %v2145_v57, %v466_v41 }
 0x408   :  { %2146 = vrcp.f32 %v386_v27  ;;  %v419_v62 = vand.u32 2147483648, %v386_v27  ;;  %v417_v1 = vand.u32 2147483647, %v386_v27  ;;  %vm413_vm13 = vweird.f32 %v386_v27 }
 0x409   :  { %v468_v3 = vadd.f32 %v2145_v57, %v467_v63  ;;  %2148 = vrcp.f32 %v2236_v54 }
 0x40a   :  { %v420_v21 = vor.u32 1.1754944e-38, %v419_v62  ;;  %vm418_vm2 = vcmp.eq.f32.partialorder %v417_v1, 8.507059e+37  ;;  %v47_v1 = vld [vmem:[%s2836_s4 + $0x18] sm:$0xff] }
 0x40b   :  { %v472_v11 = vsel %vm471_vm4, %v2145_v57, %v468_v3  ;;  %878 = vmatpush.msrb.mxu0 %v47_v1  ;;  %v44_v3 = vld [vmem:[%s2836_s4] sm:$0xff] }
 0x40c   :  { %v477_v13 = vsel %vm474_vm5, %v476_v12, %v472_v11  ;;  %v54_v11 = vld [vmem:[%s2838_s6 + $0x28] sm:$0xff] }
 0x40d   :  { %v524_v15 = vmul.f32 %v2419_v56, %v477_v13  ;;  %v43_v56 = vld [vmem:[%s2835_s3 + $0x18] sm:$0xff] }
 0x40e   :  { %v2147_v60 = vpop.eup %2146 }
 0x40f   :  { %v409_v26 = vmul.f32 %v2147_v60, %v386_v27  ;;  %vm414_vm12 = vweird.f32 %v2147_v60  ;;  %v2149_v18 = vpop.eup %2148 }
 0x410   :  { %vm415_vm14 = vmor %vm413_vm13, %vm414_vm12  ;;  %v807_v23 = vmul.f32 32.0, %v2149_v18  ;;  %vm811_vm8 = vweird.f32 %v2149_v18 }
 0x411   :  { %v410_v40 = vsub.f32 1.0, %v409_v26 }
 0x412   :  { %v808_v55 = vsub.f32 1.0, %v807_v23 }
 0x413   :  { %v411_v0 = vmul.f32 %v2147_v60, %v410_v40 }
 0x414   :  { %v809_v61 = vmul.f32 %v2149_v18, %v808_v55 }
 0x415   :  { %v412_v2 = vadd.f32 %v2147_v60, %v411_v0 }
 0x416   :  { %v810_v27 = vadd.f32 %v2149_v18, %v809_v61 }
 0x417   :  { %v416_v6 = vsel %vm415_vm14, %v2147_v60, %v412_v2  ;;  %v46_v2 = vld [vmem:[%s2836_s4 + $0x10] sm:$0xff] }
 0x418   :  { %v421_v10 = vsel %vm418_vm2, %v420_v21, %v416_v6  ;;  %v2493_v57 = vsel %vm811_vm8, %v2149_v18, %v810_v27  ;;  %879 = vmatpush.msrb.mxu0 %v46_v2  ;;  %v45_v21 = vld [vmem:[%s2836_s4 + $0x8] sm:$0xff]  ;;  %v891_v18 = vperm.slane %v2486_v47, 1 }
 0x419   :  { %v520_v9 = vmul.f32 %v2423_v59, %v421_v10 }
 0x41a   :  { %880 = vmatpush.msrb.mxu0 %v45_v21 }
 0x41b   :  { %1989 = vmatmul.msk.f32.vlgmr.msrb.gmra.mxu3 %vm159_vm1, %v520_v9  ;;  %v55_v9 = vld [vmem:[%s2838_s6 + $0x30] sm:$0xff] }
 0x41c   :  { %881 = vmatpush.msrb.mxu0 %v44_v3  ;;  %908 = vmatpush.msrb.mxu1 %v55_v9 }
 0x41e   :  { %909 = vmatpush.msrb.mxu1 %v54_v11 }
 0x41f   :  { %v633_v14 = vpop.permute.xlu1 %632 }
 0x420   :  { %653 = vmatpush.msra.mxu3 %v633_v14  ;;  %v53_v14 = vld [vmem:[%s2838_s6 + $0x20] sm:$0xff] }
 0x421   :  { %910 = vmatpush.msrb.mxu1 %v53_v14 }
 0x422   :  { %787 = vmatpush.msrb.mxu3 %v43_v56 }
 0x423   :  { %1993 = vmatmul.msk.f32.vlgmr.msra.gmra.mxu3 %vm159_vm1, %v524_v15 }
 0x424   :  { %788 = vmatpush.msrb.mxu3 %v42_v24 }
 0x426   :  { %789 = vmatpush.msrb.mxu3 %v41_v25 }
 0x428   :  { %790 = vmatpush.msrb.mxu3 %v40_v28  ;;  %v851_v28 = vperm.slane %v2486_v47, 2 }
 0x430   :  { %v738_v31 = vpop.permute.xlu2 %737 }
 0x44b   :  { %v681_v16 = vpop.f32.mrf.mxu0 }
 0x44c   :  { %754 = vrot.lane.b32.xlu1 %v681_v16, %s2233_s27 }
 0x45d   :  { %v603_v20 = vpop.f32.mrf.mxu1 }
 0x45e   :  { %741 = vrot.lane.b32.xlu0 %v603_v20, %s2234_s28  ;;  %v52_v20 = vld [vmem:[%s2838_s6 + $0x18] sm:$0xff] }
 0x45f   :  { %911 = vmatpush.msrb.mxu1 %v52_v20 }
 0x463   :  { %v733_v59 = vpop.f32.mrf.mxu2 }
 0x464   :  { %762 = vrot.lane.b32.xlu2 %v733_v59, %s2235_s29 }
 0x465   :  { %v707_v22 = vpop.f32.mrf.mxu1 }
 0x466   :  { %745 = vrot.lane.b32.xlu0 %v629_v19, %s2235_s29 }
 0x46e   :  { %758 = vrot.lane.b32.xlu0 %v707_v22, %s2234_s28 }
 0x49e   :  { %v551_v30 = vpop.f32.mrf.mxu3 }
 0x49f   :  { %v748_v32 = vsel %vm159_vm1, %v551_v30, %v738_v31 }
 0x4a6   :  { %v655_v38 = vpop.f32.mrf.mxu3 }
 0x4be   :  { %v755_v36 = vpop.permute.xlu1 %754  ;;  %v763_v44 = vpop.permute.xlu2 %762 }
 0x4bf   :  { %v765_v39 = vsel %vm159_vm1, %v655_v38, %v755_v36 }
 0x4d0   :  { %v742_v29 = vpop.permute.xlu0 %741 }
 0x4d1   :  { %v750_v33 = vsel %vm749_vm6, %v748_v32, %v742_v29 }
 0x4d8   :  { %v746_v35 = vpop.permute.xlu0 %745 }
 0x4d9   :  { %v752_v17 = vsel %vm751_vm7, %v750_v33, %v746_v35  ;;  %v854_v33 = vperm.slane %v2486_v47, 3 }
 0x4da   :  { %1997 = vmatmul.msk.f32.vlgmr.msrb.gmra.mxu3 %vm61_vm0, %v752_v17 }
 0x4e0   :  { %v759_v43 = vpop.permute.xlu0 %758 }
 0x4e1   :  { %v766_v45 = vsel %vm749_vm6, %v765_v39, %v759_v43 }
 0x4e2   :  { %v767_v46 = vsel %vm751_vm7, %v766_v45, %v763_v44 }
 0x4e3   :  { %1998 = vmatmul.msk.f32.gmra.mxu3 %vm61_vm0, %v767_v46 }
 0x55d   :  { %v792_v49 = vpop.f32.mrf.mxu3 }
 0x55e   :  { %v793_v42 = vadd.f32 %v792_v49, %v768_v48  ;;  %v50_v49 = vld [vmem:[%s2838_s6 + $0x8] sm:$0xff] }
 0x560   :  { %v798_v50 = vadd.f32 %v793_v42, %v2304_v4  ;;  %v49_v42 = vld [vmem:[%s2838_s6] sm:$0xff] }
 0x562   :  { %v800_v51 = vsel %vm61_vm0, %v798_v50, 0.0 }
 0x563   :  { %801 = vadd.xlane.f32.xlu1 %v800_v51 }
 0x566   :  { %v795_v52 = vpop.f32.mrf.mxu3 }
 0x567   :  { %v796_v34 = vadd.f32 %v795_v52, %v768_v48  ;;  %v51_v48 = vld [vmem:[%s2838_s6 + $0x10] sm:$0xff] }
 0x568   :  { %912 = vmatpush.msrb.mxu1 %v51_v48 }
 0x569   :  { %v799_v37 = vadd.f32 %v796_v34, %v2311_v5 }
 0x56a   :  { %913 = vmatpush.msrb.mxu1 %v50_v49 }
 0x56b   :  { %v803_v53 = vsel %vm61_vm0, %v799_v37, 0.0 }
 0x56c   :  { %804 = vadd.xlane.f32.xlu0 %v803_v53  ;;  %914 = vmatpush.msrb.mxu1 %v49_v42 }
 0x5d6   :  { %v802_v4 = vpop.xlane.xlu1 %801 }
 0x5d7   :  { %v813_v58 = vmul.f32 %v2493_v57, %v802_v4 }
 0x5d9   :  { %v815_v60 = vsub.f32 %v798_v50, %v813_v58  ;;  %v2113_v50 = vld [vmem:[%s2837_s5] ss:$0 sm:$0xff] }
 0x5db   :  { %v817_v41 = vmul.f32 %v815_v60, %v815_v60 }
 0x5dd   :  { %v819_v5 = vsel %vm61_vm0, %v817_v41, 0.0 }
 0x5de   :  { %820 = vadd.xlane.f32.xlu2 %v819_v5 }
 0x5df   :  { %v805_v26 = vpop.xlane.xlu0 %804 }
 0x5e0   :  { %v814_v40 = vmul.f32 %v2493_v57, %v805_v26 }
 0x5e2   :  { %v816_v62 = vsub.f32 %v799_v37, %v814_v40 }
 0x5e4   :  { %v818_v63 = vmul.f32 %v816_v62, %v816_v62 }
 0x5e6   :  { %v822_v0 = vsel %vm61_vm0, %v818_v63, 0.0 }
 0x5e7   :  { %823 = vadd.xlane.f32.xlu1 %v822_v0 }
 0x651   :  { %v821_v6 = vpop.xlane.xlu2 %820 }
 0x652   :  { %v825_v7 = vmul.f32 %v821_v6, %v2493_v57  ;;  %v2006_v6 = vld [vmem:[%s2833_s1 + $0x38] sm:$0xff] }
 0x653   :  { %1025 = vmatpush.msra.mxu2 %v2006_v6 }
 0x654   :  { %v827_v10 = vadd.f32 1e-05, %v825_v7  ;;  %v2005_v7 = vld [vmem:[%s2833_s1 + $0x30] sm:$0xff] }
 0x655   :  { %1026 = vmatpush.msra.mxu2 %v2005_v7 }
 0x656   :  { %2150 = vrsqrt.f32 %v827_v10  ;;  %vm835_vm10 = vweird.f32 %v827_v10 }
 0x65a   :  { %v824_v12 = vpop.xlane.xlu1 %823 }
 0x65b   :  { %v826_v13 = vmul.f32 %v824_v12, %v2493_v57 }
 0x65c   :  { %v2151_v15 = vpop.eup %2150 }
 0x65d   :  { %v830_v16 = vmul.f32 %v2151_v15, %v827_v10  ;;  %v828_v19 = vadd.f32 1e-05, %v826_v13  ;;  %vm836_vm9 = vweird.f32 %v2151_v15  ;;  %v2004_v10 = vld [vmem:[%s2833_s1 + $0x28] sm:$0xff] }
 0x65e   :  { %vm837_vm11 = vmor %vm835_vm10, %vm836_vm9  ;;  %1027 = vmatpush.msra.mxu2 %v2004_v10 }
 0x65f   :  { %v831_v59 = vmul.f32 %v2151_v15, %v830_v16  ;;  %2152 = vrsqrt.f32 %v828_v19  ;;  %vm845_vm13 = vweird.f32 %v828_v19 }
 0x660   :  { %1028 = vmatpush.msra.mxu2 %v2003_v8 }
 0x661   :  { %v832_v22 = vmul.f32 0.5, %v831_v59 }
 0x663   :  { %v833_v56 = vsub.f32 1.5, %v832_v22 }
 0x665   :  { %v2153_v24 = vpop.eup %2152  ;;  %v834_v25 = vmul.f32 %v2151_v15, %v833_v56 }
 0x666   :  { %v840_v29 = vmul.f32 %v2153_v24, %v828_v19  ;;  %vm846_vm12 = vweird.f32 %v2153_v24 }
 0x667   :  { %v838_v30 = vsel %vm837_vm11, %v2151_v15, %v834_v25  ;;  %vm847_vm14 = vmor %vm845_vm13, %vm846_vm12  ;;  %v968_v25 = vperm.slane %v2486_v47, 4 }
 0x668   :  { %v849_v31 = vmul.f32 %v838_v30, %v815_v60  ;;  %v841_v32 = vmul.f32 %v2153_v24, %v840_v29 }
 0x66a   :  { %v852_v35 = vmul.f32 %v851_v28, %v849_v31  ;;  %v842_v17 = vmul.f32 0.5, %v841_v32  ;;  %v971_v32 = vperm.slane %v2486_v47, 5  ;;  %v2114_v47 = vld [vmem:[%s2834_s2 + $0x1] ss:$0 sm:$0xff] }
 0x66c   :  { %v843_v36 = vsub.f32 1.5, %v842_v17  ;;  %v855_v38 = vadd.f32 %v854_v33, %v852_v35 }
 0x66e   :  { %v844_v39 = vmul.f32 %v2153_v24, %v843_v36  ;;  %1999 = vmatmul.msk.f32.vlgmr.msrb.gmra.mxu0 %vm61_vm0, %v855_v38 }
 0x670   :  { %v848_v43 = vsel %vm847_vm14, %v2153_v24, %v844_v39 }
 0x671   :  { %v850_v44 = vmul.f32 %v848_v43, %v816_v62 }
 0x673   :  { %v853_v45 = vmul.f32 %v851_v28, %v850_v44 }
 0x675   :  { %v856_v46 = vadd.f32 %v854_v33, %v853_v45 }
 0x677   :  { %2000 = vmatmul.msk.f32.gmra.mxu0 %vm61_vm0, %v856_v46 }
 0x6eb   :  { %v883_v51 = vpop.f32.mrf.mxu0 }
 0x6ec   :  { %v884_v52 = vadd.f32 %v2113_v50, %v883_v51 }
 0x6ee   :  { %v889_v34 = vmax.f32 %v884_v52, 0.0 }
 0x6f0   :  { %2001 = vmatmul.msk.f32.vlgmr.msrb.gmra.mxu1 %vm892_vm15, %v889_v34 }
 0x6f4   :  { %v886_v37 = vpop.f32.mrf.mxu0 }
 0x6f5   :  { %v887_v53 = vadd.f32 %v2113_v50, %v886_v37 }
 0x6f7   :  { %v890_v54 = vmax.f32 %v887_v53, 0.0 }
 0x6f9   :  { %2002 = vmatmul.msk.f32.gmra.mxu1 %vm892_vm15, %v890_v54 }
 0x76d   :  { %v916_v23 = vpop.f32.mrf.mxu1 }
 0x76e   :  { %v917_v55 = vadd.f32 %v916_v23, %v891_v18 }
 0x770   :  { %v922_v61 = vadd.f32 %v917_v55, %v855_v38 }
 0x772   :  { %v924_v27 = vsel %vm61_vm0, %v922_v61, 0.0 }
 0x773   :  { %925 = vadd.xlane.f32.xlu0 %v924_v27 }
 0x776   :  { %v919_v4 = vpop.f32.mrf.mxu1 }
 0x777   :  { %v920_v58 = vadd.f32 %v919_v4, %v891_v18 }
 0x779   :  { %v923_v60 = vadd.f32 %v920_v58, %v856_v46 }
 0x77b   :  { %v927_v41 = vsel %vm61_vm0, %v923_v60, 0.0 }
 0x77c   :  { %928 = vadd.xlane.f32.xlu2 %v927_v41 }
 0x7e6   :  { %v926_v5 = vpop.xlane.xlu0 %925 }
 0x7e7   :  { %v930_v26 = vmul.f32 %v926_v5, %v2493_v57 }
 0x7e9   :  { %v932_v40 = vsub.f32 %v922_v61, %v930_v26 }
 0x7eb   :  { %v934_v62 = vmul.f32 %v932_v40, %v932_v40 }
 0x7ed   :  { %v936_v63 = vsel %vm61_vm0, %v934_v62, 0.0 }
 0x7ee   :  { %937 = vadd.xlane.f32.xlu1 %v936_v63 }
 0x7ef   :  { %v929_v0 = vpop.xlane.xlu2 %928 }
 0x7f0   :  { %v931_v1 = vmul.f32 %v929_v0, %v2493_v57 }
 0x7f2   :  { %v933_v2 = vsub.f32 %v923_v60, %v931_v1 }
 0x7f4   :  { %v935_v21 = vmul.f32 %v933_v2, %v933_v2 }
 0x7f6   :  { %v939_v3 = vsel %vm61_vm0, %v935_v21, 0.0 }
 0x7f7   :  { %940 = vadd.xlane.f32.xlu0 %v939_v3 }
 0x861   :  { %v938_v9 = vpop.xlane.xlu1 %937 }
 0x862   :  { %v942_v11 = vmul.f32 %v938_v9, %v2493_v57 }
 0x864   :  { %v944_v12 = vadd.f32 1e-05, %v942_v11 }
 0x866   :  { %2154 = vrsqrt.f32 %v944_v12  ;;  %vm952_vm3 = vweird.f32 %v944_v12 }
 0x86a   :  { %v941_v13 = vpop.xlane.xlu0 %940 }
 0x86b   :  { %v943_v14 = vmul.f32 %v941_v13, %v2493_v57 }
 0x86c   :  { %v2155_v15 = vpop.eup %2154 }
 0x86d   :  { %v947_v16 = vmul.f32 %v2155_v15, %v944_v12  ;;  %v945_v19 = vadd.f32 1e-05, %v943_v14  ;;  %vm953_vm2 = vweird.f32 %v2155_v15 }
 0x86e   :  { %vm954_vm4 = vmor %vm952_vm3, %vm953_vm2 }
 0x86f   :  { %v948_v20 = vmul.f32 %v2155_v15, %v947_v16  ;;  %2156 = vrsqrt.f32 %v945_v19  ;;  %vm962_vm8 = vweird.f32 %v945_v19 }
 0x871   :  { %v949_v59 = vmul.f32 0.5, %v948_v20 }
 0x873   :  { %v950_v22 = vsub.f32 1.5, %v949_v59 }
 0x875   :  { %v2157_v56 = vpop.eup %2156  ;;  %v951_v24 = vmul.f32 %v2155_v15, %v950_v22 }
 0x876   :  { %v957_v28 = vmul.f32 %v2157_v56, %v945_v19  ;;  %vm963_vm5 = vweird.f32 %v2157_v56 }
 0x877   :  { %v955_v29 = vsel %vm954_vm4, %v2155_v15, %v951_v24  ;;  %vm964_vm9 = vmor %vm962_vm8, %vm963_vm5 }
 0x878   :  { %v966_v30 = vmul.f32 %v955_v29, %v932_v40  ;;  %v958_v31 = vmul.f32 %v2157_v56, %v957_v28 }
 0x87a   :  { %v969_v33 = vmul.f32 %v968_v25, %v966_v30  ;;  %v959_v35 = vmul.f32 0.5, %v958_v31 }
 0x87c   :  { %v960_v17 = vsub.f32 1.5, %v959_v35  ;;  %v2569_v36 = vadd.f32 %v971_v32, %v969_v33 }
 0x87e   :  { %v961_v38 = vmul.f32 %v2157_v56, %v960_v17  ;;  %2026 = vmatmul.msk.f32.vlgmr.msra.gmra.mxu2 %vm61_vm0, %v2569_v36 }
 0x880   :  { %v965_v39 = vsel %vm964_vm9, %v2157_v56, %v961_v38 }
 0x881   :  { %v967_v43 = vmul.f32 %v965_v39, %v933_v2 }
 0x883   :  { %v970_v44 = vmul.f32 %v968_v25, %v967_v43 }
 0x885   :  { %v2573_v45 = vadd.f32 %v971_v32, %v970_v44 }
 0x887   :  { %2027 = vmatmul.msk.f32.gmra.mxu2 %vm61_vm0, %v2573_v45 }
 0x901   :  { %v1030_v46 = vpop.f32.mrf.mxu2 }
 0x902   :  { %v1031_v48 = vadd.f32 %v2114_v47, %v1030_v46 }
 0x904   :  { %1078 = vrot.lane.b32.xlu0 %v1031_v48, %s2228_s23 }
 0x90a   :  { %v1033_v49 = vpop.f32.mrf.mxu2 }
 0x90b   :  { %v1034_v42 = vadd.f32 %v2114_v47, %v1033_v49 }
 0x90d   :  { %v2087_v50 = vpack.i.bf16 %v1034_v42, %v1031_v48 }
 0x90f   :  { %2088 = vrot.lane.b32.xlu2 %v2087_v50, %s2231_s25 }
 0x917   :  { %1080 = vrot.lane.b32.xlu2 %v1031_v48, %s2230_s0 }
 0x91f   :  { %1084 = vrot.lane.b32.xlu2 %v1034_v42, %s2228_s23 }
 0x927   :  { %1076 = vrot.lane.b32.xlu2 %v1031_v48, %s2229_s24 }
 0x92f   :  { %1082 = vrot.lane.b32.xlu2 %v1034_v42, %s2229_s24 }
 0x969   :  { %v2089_v51 = vpop.permute.xlu2 %2088 }
 0x96a   :  { %v2090_v52 = vunpack.i.l.bf16 %v2089_v51  ;;  %v2091_v34 = vunpack.i.h.bf16 %v2089_v51 }
 0x96c   :  { %1044 = vxpose.xlu1.b32.start [1/2] (short) (narrow) %v2090_v52, 32 }
 0x971   :  { %v2586_v37 = vpop.permute.xlu2 %1080 }
 0x974   :  { %1045 = vxpose.xlu1.b32.end [2/2] (short) (narrow) %v2091_v34, 32 }
 0x976   :  { %v2595_v61 = vpop.permute.xlu0 %1078 }
 0x977   :  { %v2097_v30 = vpack.i.bf16 %v2586_v37, %v2595_v61 }
 0x979   :  { %v2588_v53 = vpop.permute.xlu2 %1084 }
 0x981   :  { %v2591_v23 = vpop.permute.xlu2 %1076 }
 0x989   :  { %v2617_v3 = vpop.permute.xlu2 %1082 }
 0xa10   :  { %v1060_v54 = vpop.trf.xlu1 }
 0xa11   :  { %1121 = vmatpush.msra.mxu3 %v1060_v54 }
 0xa12   :  { %2028 = vmatmul.msk.f32.vlgmr.msra.gmra.mxu3 %vm159_vm1, %v1031_v48 }
 0xa18   :  { %v1061_v18 = vpop.trf.xlu1 }
 0xa19   :  { %1143 = vmatpush.msra.mxu0 %v1061_v18 }
 0xa1a   :  { %2029 = vmatmul.msk.f32.vlgmr.msra.gmra.mxu0 %vm159_vm1, %v2591_v23 }
 0xa20   :  { %v1062_v55 = vpop.trf.xlu1 }
 0xa21   :  { %1165 = vmatpush.msrb.mxu2 %v1062_v55 }
 0xa22   :  { %2030 = vmatmul.msk.f32.vlgmr.msrb.gmra.mxu2 %vm159_vm1, %v2595_v61 }
 0xa28   :  { %v1063_v27 = vpop.trf.xlu1 }
 0xa29   :  { %v2092_v4 = vpack.i.bf16 %v1063_v27, %v1062_v55  ;;  %1187 = vmatpush.msrb.mxu3 %v1063_v27 }
 0xa2a   :  { %2031 = vmatmul.msk.f32.vlgmr.msrb.gmra.mxu3 %vm159_vm1, %v2586_v37 }
 0xa2b   :  { %2093 = vrot.lane.b32.xlu0 %v2092_v4, %s2229_s24 }
 0xa33   :  { %1086 = vrot.lane.b32.xlu0 %v1034_v42, %s2230_s0 }
 0xa3b   :  { %1093 = vrot.lane.b32.xlu0 %v1061_v18, %s2229_s24 }
 0xa43   :  { %1089 = vrot.lane.b32.xlu0 %v1060_v54, %s2229_s24 }
 0xa95   :  { %v2605_v58 = vpop.f32.mrf.mxu3 }
 0xa96   :  { %v1280_v60 = vsel %vm159_vm1, %v2605_v58, -inf }
 0xa97   :  { %v1145_v41 = vpop.f32.mrf.mxu0  ;;  %1281 = vmax.xlane.f32.xlu0 %v1280_v60 }
 0xa98   :  { %v1283_v5 = vsel %vm159_vm1, %v1145_v41, -inf }
 0xa99   :  { %1284 = vmax.xlane.f32.xlu1 %v1283_v5 }
 0xa9d   :  { %v2094_v26 = vpop.permute.xlu0 %2093 }
 0xa9e   :  { %v2096_v40 = vunpack.i.h.bf16 %v2094_v26  ;;  %v2095_v62 = vunpack.i.l.bf16 %v2094_v26 }
 0xaa0   :  { %1253 = vmatpush.msra.mxu2 %v2095_v62  ;;  %1275 = vmatpush.msra.mxu3 %v2096_v40 }
 0xaa1   :  { %2034 = vmatmul.msk.f32.vlgmr.msra.gmra.mxu2 %vm159_vm1, %v2588_v53 }
 0xaa5   :  { %v1167_v63 = vpop.f32.mrf.mxu2  ;;  %v2612_v0 = vpop.permute.xlu0 %1086 }
 0xaa6   :  { %2035 = vmatmul.msk.f32.vlgmr.msra.gmra.mxu3 %vm159_vm1, %v2612_v0  ;;  %v1286_v1 = vsel %vm159_vm1, %v1167_v63, -inf  ;;  %v2107_v40 = vpack.i.bf16 %v2617_v3, %v2612_v0  ;;  %v2102_v0 = vpack.i.bf16 %v2588_v53, %v2591_v23 }
 0xaa7   :  { %1287 = vmax.xlane.f32.xlu2 %v1286_v1 }
 0xaad   :  { %v1189_v2 = vpop.f32.mrf.mxu3  ;;  %v1094_v21 = vpop.permute.xlu0 %1093 }
 0xaae   :  { %1231 = vmatpush.msra.mxu1 %v1094_v21  ;;  %v1289_v6 = vsel %vm159_vm1, %v1189_v2, -inf }
 0xaaf   :  { %1290 = vmax.xlane.f32.xlu0 %v1289_v6  ;;  %2033 = vmatmul.msk.f32.vlgmr.msra.gmra.mxu1 %vm159_vm1, %v2617_v3 }
 0xab2   :  { %1472 = vrot.lane.b32.xlu1 %v1031_v48, %s2232_s26 }
 0xab5   :  { %v1090_v7 = vpop.permute.xlu0 %1089 }
 0xab6   :  { %1209 = vmatpush.msrb.mxu0 %v1090_v7 }
 0xab7   :  { %2032 = vmatmul.msk.f32.vlgmr.msrb.gmra.mxu0 %vm159_vm1, %v1034_v42 }
 0xaba   :  { %1576 = vrot.lane.b32.xlu1 %v1034_v42, %s2232_s26 }
 0xb0a   :  { %v2629_v14 = vpop.xlane.xlu0 %1281 }
 0xb0b   :  { %v1304_v3 = vsub.f32 %v2605_v58, %v2629_v14 }
 0xb0c   :  { %v1285_v10 = vpop.xlane.xlu1 %1284 }
 0xb0d   :  { %v1305_v8 = vsub.f32 %v1145_v41, %v1285_v10 }
 0xb0f   :  { %v1314_v9 = vmul.f32 1.442695, %v1305_v8 }
 0xb11   :  { %2158 = vpow2.f32 %v1314_v9 }
 0xb17   :  { %v2625_v11 = vpop.eup %2158 }
 0xb18   :  { %v1331_v12 = vsel %vm159_vm1, %v2625_v11, 0.0 }
 0xb19   :  { %1332 = vadd.xlane.f32.xlu0 %v1331_v12 }
 0xb1a   :  { %v1288_v35 = vpop.xlane.xlu2 %1287 }
 0xb1b   :  { %v1306_v17 = vsub.f32 %v1167_v63, %v1288_v35 }
 0xb1d   :  { %v1316_v38 = vmul.f32 1.442695, %v1306_v17 }
 0xb22   :  { %v1291_v22 = vpop.xlane.xlu0 %1290 }
 0xb23   :  { %v1307_v24 = vsub.f32 %v1189_v2, %v1291_v22 }
 0xb24   :  { %v1473_v13 = vpop.permute.xlu1 %1472  ;;  %v1255_v56 = vpop.f32.mrf.mxu2 }
 0xb25   :  { %1493 = vmatpush.msra.mxu0 %v1473_v13  ;;  %v1298_v25 = vsel %vm159_vm1, %v1255_v56, -inf  ;;  %v1318_v28 = vmul.f32 1.442695, %v1307_v24  ;;  %v1312_v13 = vmul.f32 1.442695, %v1304_v3 }
 0xb27   :  { %2160 = vpow2.f32 %v1318_v28 }
 0xb28   :  { %2162 = vpow2.f32 %v1316_v38 }
 0xb29   :  { %v1277_v15 = vpop.f32.mrf.mxu3 }
 0xb2a   :  { %v1301_v16 = vsel %vm159_vm1, %v1277_v15, -inf }
 0xb2b   :  { %1302 = vmax.xlane.f32.xlu0 %v1301_v16 }
 0xb2c   :  { %v1577_v19 = vpop.permute.xlu1 %1576  ;;  %v1233_v20 = vpop.f32.mrf.mxu1 }
 0xb2d   :  { %1597 = vmatpush.msrb.mxu0 %v1577_v19  ;;  %v1295_v59 = vsel %vm159_vm1, %v1233_v20, -inf  ;;  %v2161_v32 = vpop.eup %2160 }
 0xb2e   :  { %1296 = vmax.xlane.f32.xlu2 %v1295_v59  ;;  %v1337_v33 = vsel %vm159_vm1, %v2161_v32, 0.0  ;;  %v2642_v39 = vpop.eup %2162 }
 0xb2f   :  { %v1334_v43 = vsel %vm159_vm1, %v2642_v39, 0.0 }
 0xb34   :  { %v2634_v29 = vpop.f32.mrf.mxu0 }
 0xb35   :  { %v1292_v31 = vsel %vm159_vm1, %v2634_v29, -inf }
 0xb36   :  { %1299 = vmax.xlane.f32.xlu2 %v1298_v25 }
 0xb3e   :  { %1293 = vmax.xlane.f32.xlu2 %v1292_v31 }
 0xb3f   :  { %2098 = vrot.lane.b32.xlu0 %v2097_v30, %s2232_s26 }
 0xb46   :  { %1338 = vadd.xlane.f32.xlu2 %v1337_v33 }
 0xb69   :  { %1335 = vadd.xlane.f32.xlu0 %v1334_v43 }
 0xb8c   :  { %v2646_v44 = vpop.xlane.xlu0 %1332 }
 0xb8d   :  { %vm1371_vm9 = vweird.f32 %v2646_v44 }
 0xb9e   :  { %v1303_v47 = vpop.xlane.xlu0 %1302 }
 0xb9f   :  { %v1311_v46 = vsub.f32 %v1277_v15, %v1303_v47 }
 0xba1   :  { %v1326_v48 = vmul.f32 1.442695, %v1311_v46  ;;  %v1297_v49 = vpop.xlane.xlu2 %1296 }
 0xba2   :  { %v1309_v42 = vsub.f32 %v1233_v20, %v1297_v49 }
 0xba3   :  { %2164 = vpow2.f32 %v1326_v48 }
 0xba4   :  { %v1322_v50 = vmul.f32 1.442695, %v1309_v42 }
 0xba6   :  { %2166 = vpow2.f32 %v1322_v50 }
 0xba9   :  { %v2648_v51 = vpop.eup %2164  ;;  %v1300_v52 = vpop.xlane.xlu2 %1299 }
 0xbaa   :  { %v1310_v34 = vsub.f32 %v1255_v56, %v1300_v52  ;;  %v1349_v37 = vsel %vm159_vm1, %v2648_v51, 0.0 }
 0xbab   :  { %1350 = vadd.xlane.f32.xlu0 %v1349_v37 }
 0xbac   :  { %v2652_v54 = vpop.eup %2166  ;;  %v1324_v18 = vmul.f32 1.442695, %v1310_v34 }
 0xbad   :  { %v1343_v55 = vsel %vm159_vm1, %v2652_v54, 0.0 }
 0xbae   :  { %2168 = vpow2.f32 %v1324_v18  ;;  %1344 = vadd.xlane.f32.xlu2 %v1343_v55  ;;  %v1377_v18 = vand.u32 2147483648, %v2646_v44 }
 0xbb1   :  { %v2099_v61 = vpop.permute.xlu0 %2098  ;;  %v1294_v27 = vpop.xlane.xlu2 %1293 }
 0xbb2   :  { %v2101_v4 = vunpack.i.h.bf16 %v2099_v61  ;;  %v2100_v60 = vunpack.i.l.bf16 %v2099_v61  ;;  %v1308_v59 = vsub.f32 %v2634_v29, %v1294_v27  ;;  %v1375_v27 = vand.u32 2147483647, %v2646_v44 }
 0xbb4   :  { %v2656_v41 = vpop.eup %2168  ;;  %1545 = vmatpush.msrb.mxu2 %v2100_v60  ;;  %1571 = vmatpush.msrb.mxu3 %v2101_v4  ;;  %v1320_v25 = vmul.f32 1.442695, %v1308_v59 }
 0xbb5   :  { %v1346_v5 = vsel %vm159_vm1, %v2656_v41, 0.0 }
 0xbb6   :  { %1347 = vadd.xlane.f32.xlu2 %v1346_v5 }
 0xbb9   :  { %v1339_v26 = vpop.xlane.xlu2 %1338 }
 0xbba   :  { %2170 = vrcp.f32 %v1339_v26  ;;  %v1405_v2 = vand.u32 2147483648, %v1339_v26  ;;  %v1403_v6 = vand.u32 2147483647, %v1339_v26  ;;  %vm1399_vm11 = vweird.f32 %v1339_v26 }
 0xbbc   :  { %v1406_v10 = vor.u32 1.1754944e-38, %v1405_v2  ;;  %vm1404_vm13 = vcmp.eq.f32.partialorder %v1403_v6, 8.507059e+37 }
 0xbbf   :  { %2108 = vrot.lane.b32.xlu0 %v2107_v40, %s2232_s26 }
 0xbc0   :  { %v2171_v62 = vpop.eup %2170 }
 0xbc1   :  { %v1395_v63 = vmul.f32 %v2171_v62, %v1339_v26  ;;  %vm1400_vm10 = vweird.f32 %v2171_v62 }
 0xbc2   :  { %vm1401_vm12 = vmor %vm1399_vm11, %vm1400_vm10 }
 0xbc3   :  { %v1396_v1 = vsub.f32 1.0, %v1395_v63 }
 0xbc5   :  { %v1397_v21 = vmul.f32 %v2171_v62, %v1396_v1 }
 0xbc7   :  { %v1398_v7 = vadd.f32 %v2171_v62, %v1397_v21 }
 0xbc9   :  { %v1402_v8 = vsel %vm1401_vm12, %v2171_v62, %v1398_v7  ;;  %v1378_v62 = vor.u32 1.1754944e-38, %v1377_v18 }
 0xbca   :  { %v1407_v9 = vsel %vm1404_vm13, %v1406_v10, %v1402_v8 }
 0xbcb   :  { %v1467_v12 = vmul.f32 %v2161_v32, %v1407_v9 }
 0xbcd   :  { %2039 = vmatmul.msk.f32.vlgmr.msrb.gmra.mxu3 %vm159_vm1, %v1467_v12 }
 0xbce   :  { %2103 = vrot.lane.b32.xlu2 %v2102_v0, %s2232_s26 }
 0xbdc   :  { %v1336_v15 = vpop.xlane.xlu0 %1335 }
 0xbdd   :  { %2172 = vrcp.f32 %v1336_v15  ;;  %v1391_v56 = vand.u32 2147483648, %v1336_v15  ;;  %v1389_v23 = vand.u32 2147483647, %v1336_v15  ;;  %vm1385_vm2 = vweird.f32 %v1336_v15 }
 0xbde   :  { %2174 = vpow2.f32 %v1312_v13 }
 0xbdf   :  { %v1392_v14 = vor.u32 1.1754944e-38, %v1391_v56  ;;  %vm1390_vm4 = vcmp.eq.f32.partialorder %v1389_v23, 8.507059e+37  ;;  %2176 = vpow2.f32 %v1320_v25 }
 0xbe0   :  { %2178 = vrcp.f32 %v2646_v44 }
 0xbe3   :  { %v2173_v16 = vpop.eup %2172 }
 0xbe4   :  { %v1381_v19 = vmul.f32 %v2173_v16, %v1336_v15  ;;  %v2669_v20 = vpop.eup %2174  ;;  %vm1386_vm14 = vweird.f32 %v2173_v16 }
 0xbe5   :  { %v1328_v24 = vsel %vm159_vm1, %v2669_v20, 0.0  ;;  %vm1387_vm3 = vmor %vm1385_vm2, %vm1386_vm14  ;;  %v2676_v31 = vpop.eup %2176  ;;  %vm1376_vm14 = vcmp.eq.f32.partialorder %v1375_v27, 8.507059e+37 }
 0xbe6   :  { %v1382_v22 = vsub.f32 1.0, %v1381_v19  ;;  %v1340_v32 = vsel %vm159_vm1, %v2676_v31, 0.0  ;;  %v2179_v33 = vpop.eup %2178 }
 0xbe7   :  { %v1367_v35 = vmul.f32 %v2179_v33, %v2646_v44  ;;  %vm1372_vm5 = vweird.f32 %v2179_v33 }
 0xbe8   :  { %v1383_v53 = vmul.f32 %v2173_v16, %v1382_v22  ;;  %vm1373_vm10 = vmor %vm1371_vm9, %vm1372_vm5 }
 0xbe9   :  { %1329 = vadd.xlane.f32.xlu0 %v1328_v24  ;;  %v1368_v38 = vsub.f32 1.0, %v1367_v35 }
 0xbea   :  { %v1384_v58 = vadd.f32 %v2173_v16, %v1383_v53 }
 0xbeb   :  { %v1369_v47 = vmul.f32 %v2179_v33, %v1368_v38 }
 0xbec   :  { %v1388_v28 = vsel %vm1387_vm3, %v2173_v16, %v1384_v58 }
 0xbed   :  { %v1393_v30 = vsel %vm1390_vm4, %v1392_v14, %v1388_v28  ;;  %v1370_v42 = vadd.f32 %v2179_v33, %v1369_v47 }
 0xbee   :  { %v1466_v29 = vmul.f32 %v2642_v39, %v1393_v30 }
 0xbef   :  { %v1374_v60 = vsel %vm1373_vm10, %v2179_v33, %v1370_v42 }
 0xbf0   :  { %2038 = vmatmul.msk.f32.vlgmr.msrb.gmra.mxu2 %vm159_vm1, %v1466_v29  ;;  %v1379_v2 = vsel %vm1376_vm14, %v1378_v62, %v1374_v60  ;;  %v2011_v62 = vld [vmem:[%s2835_s3 + $0x38] sm:$0xff] }
 0xbf1   :  { %v1465_v19 = vmul.f32 %v2625_v11, %v1379_v2 }
 0xbf7   :  { %1341 = vadd.xlane.f32.xlu2 %v1340_v32 }
 0xc1e   :  { %v1351_v17 = vpop.xlane.xlu0 %1350 }
 0xc1f   :  { %2180 = vrcp.f32 %v1351_v17  ;;  %v1461_v37 = vand.u32 2147483648, %v1351_v17  ;;  %v1459_v55 = vand.u32 2147483647, %v1351_v17  ;;  %vm1455_vm11 = vweird.f32 %v1351_v17 }
 0xc21   :  { %v2682_v43 = vpop.xlane.xlu2 %1344  ;;  %v1462_v26 = vor.u32 1.1754944e-38, %v1461_v37  ;;  %vm1460_vm13 = vcmp.eq.f32.partialorder %v1459_v55, 8.507059e+37 }
 0xc22   :  { %2182 = vrcp.f32 %v2682_v43  ;;  %v1433_v21 = vand.u32 2147483648, %v2682_v43  ;;  %vm1427_vm3 = vweird.f32 %v2682_v43  ;;  %v1431_v15 = vand.u32 2147483647, %v2682_v43 }
 0xc24   :  { %v1434_v53 = vor.u32 1.1754944e-38, %v1433_v21  ;;  %vm1432_vm9 = vcmp.eq.f32.partialorder %v1431_v15, 8.507059e+37 }
 0xc25   :  { %v2181_v39 = vpop.eup %2180 }
 0xc26   :  { %v1451_v46 = vmul.f32 %v2181_v39, %v1351_v17  ;;  %vm1456_vm8 = vweird.f32 %v2181_v39 }
 0xc27   :  { %vm1457_vm12 = vmor %vm1455_vm11, %vm1456_vm8 }
 0xc28   :  { %v2685_v48 = vpop.eup %2182  ;;  %v1452_v49 = vsub.f32 1.0, %v1451_v46 }
 0xc29   :  { %v1423_v50 = vmul.f32 %v2685_v48, %v2682_v43  ;;  %v1348_v52 = vpop.xlane.xlu2 %1347  ;;  %vm1428_vm2 = vweird.f32 %v2685_v48 }
 0xc2a   :  { %v1453_v34 = vmul.f32 %v2181_v39, %v1452_v49  ;;  %2184 = vrcp.f32 %v1348_v52  ;;  %v1447_v16 = vand.u32 2147483648, %v1348_v52  ;;  %vm2700_vm4 = vmor %vm1427_vm3, %vm1428_vm2  ;;  %v1445_v56 = vand.u32 2147483647, %v1348_v52 }
 0xc2b   :  { %v1424_v61 = vsub.f32 1.0, %v1423_v50  ;;  %vm1441_vm8 = vweird.f32 %v1348_v52 }
 0xc2c   :  { %v1454_v4 = vadd.f32 %v2181_v39, %v1453_v34  ;;  %v1448_v11 = vor.u32 1.1754944e-38, %v1447_v16  ;;  %vm1446_vm11 = vcmp.eq.f32.partialorder %v1445_v56, 8.507059e+37 }
 0xc2d   :  { %v1425_v40 = vmul.f32 %v2685_v48, %v1424_v61 }
 0xc2e   :  { %v1458_v5 = vsel %vm1457_vm12, %v2181_v39, %v1454_v4 }
 0xc2f   :  { %v1463_v1 = vsel %vm1460_vm13, %v1462_v26, %v1458_v5  ;;  %v1426_v44 = vadd.f32 %v2685_v48, %v1425_v40 }
 0xc30   :  { %v2185_v63 = vpop.eup %2184  ;;  %v1471_v13 = vmul.f32 %v2648_v51, %v1463_v1  ;;  %v2008_v1 = vld [vmem:[%s2835_s3 + $0x20] sm:$0xff] }
 0xc31   :  { %v1437_v6 = vmul.f32 %v2185_v63, %v1348_v52  ;;  %v2109_v7 = vpop.permute.xlu0 %2108  ;;  %v2104_v10 = vpop.permute.xlu2 %2103  ;;  %vm1442_vm5 = vweird.f32 %v2185_v63  ;;  %v1430_v51 = vsel %vm2700_vm4, %v2685_v48, %v1426_v44 }
 0xc32   :  { %v2110_v8 = vunpack.i.l.bf16 %v2109_v7  ;;  %v2106_v9 = vunpack.i.h.bf16 %v2104_v10  ;;  %v2111_v0 = vunpack.i.h.bf16 %v2109_v7  ;;  %v2105_v3 = vunpack.i.l.bf16 %v2104_v10  ;;  %vm1443_vm10 = vmor %vm1441_vm8, %vm1442_vm5 }
 0xc33   :  { %v1438_v12 = vsub.f32 1.0, %v1437_v6  ;;  %v1435_v24 = vsel %vm1432_vm9, %v1434_v53, %v1430_v51 }
 0xc34   :  { %1649 = vmatpush.msra.mxu2 %v2106_v9  ;;  %1675 = vmatpush.msra.mxu3 %v2110_v8  ;;  %v1469_v28 = vmul.f32 %v2652_v54, %v1435_v24 }
 0xc35   :  { %v1439_v22 = vmul.f32 %v2185_v63, %v1438_v12  ;;  %1519 = vmatpush.msrb.mxu1 %v2105_v3  ;;  %2043 = vmatmul.msk.f32.vlgmr.msra.gmra.mxu3 %vm159_vm1, %v1471_v13 }
 0xc36   :  { %2037 = vmatmul.msk.f32.vlgmr.msrb.gmra.mxu1 %vm159_vm1, %v1465_v19  ;;  %v2746_v19 = vld [vmem:[%s2839_s7 + $0x8] sm:$0x3f] }
 0xc37   :  { %v1440_v23 = vadd.f32 %v2185_v63, %v1439_v22  ;;  %1623 = vmatpush.msra.mxu1 %v2111_v0  ;;  %v1710_v59 = vperm.slane %v2746_v19, 0 }
 0xc39   :  { %v1444_v25 = vsel %vm1443_vm10, %v2185_v63, %v1440_v23  ;;  %v2009_v63 = vld [vmem:[%s2835_s3 + $0x28] sm:$0xff] }
 0xc3a   :  { %v1449_v58 = vsel %vm1446_vm11, %v1448_v11, %v1444_v25 }
 0xc3b   :  { %v1470_v14 = vmul.f32 %v2656_v41, %v1449_v58 }
 0xc3d   :  { %2042 = vmatmul.msk.f32.vlgmr.msra.gmra.mxu2 %vm159_vm1, %v1470_v14 }
 0xc3e   :  { %2041 = vmatmul.msk.f32.vlgmr.msra.gmra.mxu1 %vm159_vm1, %v1469_v28 }
 0xc50   :  { %v1573_v30 = vpop.f32.mrf.mxu3 }
 0xc51   :  { %1689 = vrot.lane.b32.xlu1 %v1573_v30, %s2235_s29 }
 0xc5c   :  { %v1330_v29 = vpop.xlane.xlu0 %1329 }
 0xc5d   :  { %2186 = vrcp.f32 %v1330_v29  ;;  %v1363_v17 = vand.u32 2147483648, %v1330_v29  ;;  %v1361_v43 = vand.u32 2147483647, %v1330_v29  ;;  %vm1357_vm13 = vweird.f32 %v1330_v29 }
 0xc5f   :  { %v1364_v54 = vor.u32 1.1754944e-38, %v1363_v17  ;;  %vm1362_vm2 = vcmp.eq.f32.partialorder %v1361_v43, 8.507059e+37  ;;  %v2013_v43 = vld [vmem:[%s2836_s4 + $0x28] sm:$0xff] }
 0xc63   :  { %v2187_v32 = vpop.eup %2186 }
 0xc64   :  { %v1353_v33 = vmul.f32 %v2187_v32, %v1330_v29  ;;  %vm1358_vm12 = vweird.f32 %v2187_v32 }
 0xc65   :  { %vm1359_vm14 = vmor %vm1357_vm13, %vm1358_vm12 }
 0xc66   :  { %v1354_v35 = vsub.f32 1.0, %v1353_v33 }
 0xc68   :  { %v1355_v38 = vmul.f32 %v2187_v32, %v1354_v35 }
 0xc6a   :  { %v1356_v39 = vadd.f32 %v2187_v32, %v1355_v38  ;;  %v1342_v41 = vpop.xlane.xlu2 %1341  ;;  %v2014_v38 = vld [vmem:[%s2836_s4 + $0x30] sm:$0xff] }
 0xc6b   :  { %2188 = vrcp.f32 %v1342_v41  ;;  %v1419_v34 = vand.u32 2147483648, %v1342_v41  ;;  %v1417_v18 = vand.u32 2147483647, %v1342_v41  ;;  %vm1413_vm4 = vweird.f32 %v1342_v41 }
 0xc6c   :  { %v1360_v47 = vsel %vm1359_vm14, %v2187_v32, %v1356_v39  ;;  %v2012_v39 = vld [vmem:[%s2836_s4 + $0x20] sm:$0xff] }
 0xc6d   :  { %v1365_v46 = vsel %vm1362_vm2, %v1364_v54, %v1360_v47  ;;  %v1420_v61 = vor.u32 1.1754944e-38, %v1419_v34  ;;  %vm1418_vm8 = vcmp.eq.f32.partialorder %v1417_v18, 8.507059e+37  ;;  %v2021_v18 = vld [vmem:[%s2838_s6 + $0x60] sm:$0xff] }
 0xc6e   :  { %v1464_v48 = vmul.f32 %v2669_v20, %v1365_v46 }
 0xc70   :  { %2036 = vmatmul.msk.f32.vlgmr.msra.gmra.mxu0 %vm159_vm1, %v1464_v48  ;;  %v2024_v48 = vld [vmem:[%s2838_s6 + $0x78] sm:$0xff] }
 0xc71   :  { %v2189_v49 = vpop.eup %2188  ;;  %1729 = vmatpush.msra.mxu0 %v2011_v62  ;;  %1841 = vmatpush.msrb.mxu2 %v2024_v48 }
 0xc72   :  { %v1409_v42 = vmul.f32 %v2189_v49, %v1342_v41  ;;  %vm1414_vm3 = vweird.f32 %v2189_v49 }
 0xc73   :  { %v1547_v50 = vpop.f32.mrf.mxu2  ;;  %vm1415_vm5 = vmor %vm1413_vm4, %vm1414_vm3 }
 0xc74   :  { %v1410_v52 = vsub.f32 1.0, %v1409_v42  ;;  %1685 = vrot.lane.b32.xlu2 %v1547_v50, %s2234_s28  ;;  %v2022_v50 = vld [vmem:[%s2838_s6 + $0x68] sm:$0xff] }
 0xc76   :  { %v1411_v37 = vmul.f32 %v2189_v49, %v1410_v52 }
 0xc78   :  { %v1412_v55 = vadd.f32 %v2189_v49, %v1411_v37 }
 0xc7a   :  { %v1416_v27 = vsel %vm1415_vm5, %v2189_v49, %v1412_v55  ;;  %v2023_v49 = vld [vmem:[%s2838_s6 + $0x70] sm:$0xff] }
 0xc7b   :  { %v1421_v4 = vsel %vm1418_vm8, %v1420_v61, %v1416_v27  ;;  %1842 = vmatpush.msrb.mxu2 %v2023_v49  ;;  %v2020_v27 = vld [vmem:[%s2838_s6 + $0x58] sm:$0xff] }
 0xc7c   :  { %v1468_v20 = vmul.f32 %v2676_v31, %v1421_v4  ;;  %v2010_v31 = vld [vmem:[%s2835_s3 + $0x30] sm:$0xff] }
 0xc7d   :  { %1730 = vmatpush.msra.mxu0 %v2010_v31  ;;  %1843 = vmatpush.msrb.mxu2 %v2022_v50 }
 0xc7e   :  { %2040 = vmatmul.msk.f32.vlgmr.msrb.gmra.mxu0 %vm159_vm1, %v1468_v20 }
 0xc7f   :  { %1731 = vmatpush.msra.mxu0 %v2009_v63  ;;  %1844 = vmatpush.msrb.mxu2 %v2021_v18 }
 0xc81   :  { %1732 = vmatpush.msra.mxu0 %v2008_v1  ;;  %1845 = vmatpush.msrb.mxu2 %v2020_v27 }
 0xcb3   :  { %v1521_v60 = vpop.f32.mrf.mxu1 }
 0xcb4   :  { %1681 = vrot.lane.b32.xlu0 %v1521_v60, %s2233_s27  ;;  %v1786_v60 = vperm.slane %v2746_v19, 2 }
 0xcb8   :  { %v1677_v40 = vpop.f32.mrf.mxu3 }
 0xcbb   :  { %v1625_v5 = vpop.f32.mrf.mxu1 }
 0xcbc   :  { %1696 = vrot.lane.b32.xlu1 %v1625_v5, %s2233_s27 }
 0xcc0   :  { %v1651_v26 = vpop.f32.mrf.mxu2 }
 0xcc1   :  { %1700 = vrot.lane.b32.xlu0 %v1651_v26, %s2234_s28 }
 0xcc3   :  { %v1690_v2 = vpop.permute.xlu1 %1689 }
 0xcc4   :  { %1704 = vrot.lane.b32.xlu1 %v1677_v40, %s2235_s29  ;;  %v1789_v40 = vperm.slane %v2746_v19, 3 }
 0xcce   :  { %v1686_v7 = vpop.permute.xlu2 %1685 }
 0xced   :  { %v1495_v21 = vpop.f32.mrf.mxu0 }
 0xcfb   :  { %v1599_v12 = vpop.f32.mrf.mxu0 }
 0xd26   :  { %v1682_v6 = vpop.permute.xlu0 %1681 }
 0xd27   :  { %v1692_v10 = vsel %vm159_vm1, %v1495_v21, %v1682_v6 }
 0xd28   :  { %v1693_v44 = vsel %vm749_vm6, %v1692_v10, %v1686_v7 }
 0xd29   :  { %v1694_v8 = vsel %vm751_vm7, %v1693_v44, %v1690_v2 }
 0xd2a   :  { %2044 = vmatmul.msk.f32.vlgmr.msra.gmra.mxu0 %vm61_vm0, %v1694_v8 }
 0xd2e   :  { %v1697_v9 = vpop.permute.xlu1 %1696 }
 0xd2f   :  { %v1707_v0 = vsel %vm159_vm1, %v1599_v12, %v1697_v9  ;;  %v2019_v12 = vld [vmem:[%s2838_s6 + $0x50] sm:$0xff] }
 0xd30   :  { %1846 = vmatpush.msrb.mxu2 %v2019_v12 }
 0xd33   :  { %v1701_v3 = vpop.permute.xlu0 %1700 }
 0xd34   :  { %v1708_v13 = vsel %vm749_vm6, %v1707_v0, %v1701_v3  ;;  %v2018_v0 = vld [vmem:[%s2838_s6 + $0x48] sm:$0xff]  ;;  %v2017_v3 = vld [vmem:[%s2838_s6 + $0x40] sm:$0xff] }
 0xd35   :  { %1847 = vmatpush.msrb.mxu2 %v2018_v0 }
 0xd36   :  { %v1705_v15 = vpop.permute.xlu1 %1704 }
 0xd37   :  { %v1709_v16 = vsel %vm751_vm7, %v1708_v13, %v1705_v15  ;;  %1848 = vmatpush.msrb.mxu2 %v2017_v3  ;;  %v2115_v13 = vld [vmem:[%s2837_s5 + $0x1] ss:$0 sm:$0xff] }
 0xd38   :  { %2045 = vmatmul.msk.f32.gmra.mxu0 %vm61_vm0, %v1709_v16 }
 0xda7   :  { %v1734_v22 = vpop.f32.mrf.mxu0 }
 0xda8   :  { %v1735_v56 = vadd.f32 %v1734_v22, %v1710_v59 }
 0xdaa   :  { %v1740_v51 = vadd.f32 %v1735_v56, %v2569_v36 }
 0xdac   :  { %v1742_v53 = vsel %vm61_vm0, %v1740_v51, 0.0 }
 0xdad   :  { %1743 = vadd.xlane.f32.xlu2 %v1742_v53  ;;  %v1826_v53 = vperm.slane %v2746_v19, 1 }
 0xdb5   :  { %v1737_v23 = vpop.f32.mrf.mxu0 }
 0xdb6   :  { %v1738_v11 = vadd.f32 %v1737_v23, %v1710_v59 }
 0xdb8   :  { %v1741_v24 = vadd.f32 %v1738_v11, %v2573_v45  ;;  %v2015_v45 = vld [vmem:[%s2836_s4 + $0x38] sm:$0xff] }
 0xdb9   :  { %1813 = vmatpush.msrb.mxu1 %v2015_v45 }
 0xdba   :  { %v1745_v25 = vsel %vm61_vm0, %v1741_v24, 0.0 }
 0xdbb   :  { %1746 = vadd.xlane.f32.xlu0 %v1745_v25  ;;  %1814 = vmatpush.msrb.mxu1 %v2014_v38 }
 0xdbd   :  { %1815 = vmatpush.msrb.mxu1 %v2013_v43 }
 0xdbf   :  { %1816 = vmatpush.msrb.mxu1 %v2012_v39 }
 0xe20   :  { %v1744_v58 = vpop.xlane.xlu2 %1743 }
 0xe21   :  { %v1748_v14 = vmul.f32 %v1744_v58, %v2493_v57 }
 0xe23   :  { %v1750_v28 = vsub.f32 %v1740_v51, %v1748_v14 }
 0xe25   :  { %v1752_v30 = vmul.f32 %v1750_v28, %v1750_v28 }
 0xe27   :  { %v1754_v29 = vsel %vm61_vm0, %v1752_v30, 0.0 }
 0xe28   :  { %1755 = vadd.xlane.f32.xlu1 %v1754_v29 }
 0xe2e   :  { %v1747_v32 = vpop.xlane.xlu0 %1746 }
 0xe2f   :  { %v1749_v36 = vmul.f32 %v1747_v32, %v2493_v57 }
 0xe31   :  { %v1751_v33 = vsub.f32 %v1741_v24, %v1749_v36 }
 0xe33   :  { %v1753_v35 = vmul.f32 %v1751_v33, %v1751_v33 }
 0xe35   :  { %v1757_v17 = vsel %vm61_vm0, %v1753_v35, 0.0 }
 0xe36   :  { %1758 = vadd.xlane.f32.xlu2 %v1757_v17 }
 0xe9b   :  { %v1756_v41 = vpop.xlane.xlu1 %1755 }
 0xe9c   :  { %v1760_v54 = vmul.f32 %v1756_v41, %v2493_v57 }
 0xe9e   :  { %v1762_v47 = vadd.f32 1e-05, %v1760_v54 }
 0xea0   :  { %2190 = vrsqrt.f32 %v1762_v47  ;;  %vm1770_vm6 = vweird.f32 %v1762_v47 }
 0xea6   :  { %v2191_v46 = vpop.eup %2190 }
 0xea7   :  { %v1765_v42 = vmul.f32 %v2191_v46, %v1762_v47  ;;  %vm1771_vm1 = vweird.f32 %v2191_v46 }
 0xea8   :  { %vm1772_vm7 = vmor %vm1770_vm6, %vm1771_vm1 }
 0xea9   :  { %v1766_v52 = vmul.f32 %v2191_v46, %v1765_v42  ;;  %v1759_v34 = vpop.xlane.xlu2 %1758 }
 0xeaa   :  { %v1761_v37 = vmul.f32 %v1759_v34, %v2493_v57 }
 0xeab   :  { %v1767_v55 = vmul.f32 0.5, %v1766_v52 }
 0xeac   :  { %v1763_v61 = vadd.f32 1e-05, %v1761_v37 }
 0xead   :  { %v1768_v4 = vsub.f32 1.5, %v1767_v55  ;;  %v1902_v55 = vperm.slane %v2746_v19, 4 }
 0xeae   :  { %2192 = vrsqrt.f32 %v1763_v61  ;;  %vm1780_vm10 = vweird.f32 %v1763_v61 }
 0xeaf   :  { %v1769_v20 = vmul.f32 %v2191_v46, %v1768_v4  ;;  %v1905_v4 = vperm.slane %v2746_v19, 5 }
 0xeb1   :  { %v1773_v5 = vsel %vm1772_vm7, %v2191_v46, %v1769_v20 }
 0xeb2   :  { %v1784_v26 = vmul.f32 %v1773_v5, %v1750_v28 }
 0xeb4   :  { %v2193_v62 = vpop.eup %2192  ;;  %v1787_v31 = vmul.f32 %v1786_v60, %v1784_v26 }
 0xeb5   :  { %v1775_v63 = vmul.f32 %v2193_v62, %v1763_v61  ;;  %vm1781_vm9 = vweird.f32 %v2193_v62 }
 0xeb6   :  { %v1790_v1 = vadd.f32 %v1789_v40, %v1787_v31  ;;  %vm1782_vm11 = vmor %vm1780_vm10, %vm1781_vm9 }
 0xeb7   :  { %v1776_v2 = vmul.f32 %v2193_v62, %v1775_v63 }
 0xeb8   :  { %2046 = vmatmul.msk.f32.vlgmr.msrb.gmra.mxu1 %vm61_vm0, %v1790_v1 }
 0xeb9   :  { %v1777_v21 = vmul.f32 0.5, %v1776_v2 }
 0xebb   :  { %v1778_v6 = vsub.f32 1.5, %v1777_v21 }
 0xebd   :  { %v1779_v7 = vmul.f32 %v2193_v62, %v1778_v6 }
 0xebf   :  { %v1783_v10 = vsel %vm1782_vm11, %v2193_v62, %v1779_v7 }
 0xec0   :  { %v1785_v44 = vmul.f32 %v1783_v10, %v1751_v33 }
 0xec2   :  { %v1788_v8 = vmul.f32 %v1786_v60, %v1785_v44 }
 0xec4   :  { %v1791_v9 = vadd.f32 %v1789_v40, %v1788_v8 }
 0xec6   :  { %2047 = vmatmul.msk.f32.gmra.mxu1 %vm61_vm0, %v1791_v9 }
 0xf35   :  { %v1818_v15 = vpop.f32.mrf.mxu1 }
 0xf36   :  { %v1819_v16 = vadd.f32 %v2115_v13, %v1818_v15 }
 0xf38   :  { %v1824_v59 = vmax.f32 %v1819_v16, 0.0 }
 0xf3a   :  { %2048 = vmatmul.msk.f32.vlgmr.msrb.gmra.mxu2 %vm892_vm15, %v1824_v59 }
 0xf43   :  { %v1821_v22 = vpop.f32.mrf.mxu1 }
 0xf44   :  { %v1822_v56 = vadd.f32 %v2115_v13, %v1821_v22 }
 0xf46   :  { %v1825_v51 = vmax.f32 %v1822_v56, 0.0 }
 0xf48   :  { %2049 = vmatmul.msk.f32.gmra.mxu2 %vm892_vm15, %v1825_v51 }
 0xfbd   :  { %v1850_v23 = vpop.f32.mrf.mxu2 }
 0xfbe   :  { %v1851_v11 = vadd.f32 %v1850_v23, %v1826_v53 }
 0xfc0   :  { %v1856_v24 = vadd.f32 %v1851_v11, %v1790_v1 }
 0xfc2   :  { %v1858_v25 = vsel %vm61_vm0, %v1856_v24, 0.0 }
 0xfc3   :  { %1859 = vadd.xlane.f32.xlu0 %v1858_v25 }
 0xfcb   :  { %v1853_v58 = vpop.f32.mrf.mxu2 }
 0xfcc   :  { %v1854_v14 = vadd.f32 %v1853_v58, %v1826_v53 }
 0xfce   :  { %v1857_v28 = vadd.f32 %v1854_v14, %v1791_v9  ;;  %v1908_v14 = vld [vmem:[%s2840_s8] sm:$0x3]  ;;  %s2237_s8 = smov [#allocation2]  }
 0xfcf   :  { %s1965_s7 = sshll.u32 %s2237_s8, 4  ;;  %s1966_s7 = int_to_ptr.vmem [resolvable:$true] %s1965_s7 }
 0xfd0   :  { %v1861_v30 = vsel %vm61_vm0, %v1857_v28, 0.0 }
 0xfd1   :  { %1862 = vadd.xlane.f32.xlu1 %v1861_v30 }
0x1036   :  { %v1860_v29 = vpop.xlane.xlu0 %1859 }
0x1037   :  { %v1864_v32 = vmul.f32 %v1860_v29, %v2493_v57  ;;  %v1953_v29 = vperm.slane %v1908_v14, 0 }
0x1039   :  { %v1866_v36 = vsub.f32 %v1856_v24, %v1864_v32 }
0x103b   :  { %v1868_v33 = vmul.f32 %v1866_v36, %v1866_v36 }
0x103d   :  { %v1870_v35 = vsel %vm61_vm0, %v1868_v33, 0.0  ;;  %v1956_v33 = vperm.slane %v1908_v14, 1 }
0x103e   :  { %1871 = vadd.xlane.f32.xlu2 %v1870_v35 }
0x1044   :  { %v1863_v17 = vpop.xlane.xlu1 %1862 }
0x1045   :  { %v1865_v45 = vmul.f32 %v1863_v17, %v2493_v57 }
0x1047   :  { %v1867_v38 = vsub.f32 %v1857_v28, %v1865_v45 }
0x1049   :  { %v1869_v43 = vmul.f32 %v1867_v38, %v1867_v38 }
0x104b   :  { %v1873_v39 = vsel %vm61_vm0, %v1869_v43, 0.0 }
0x104c   :  { %1874 = vadd.xlane.f32.xlu0 %v1873_v39 }
0x10b1   :  { %v1872_v41 = vpop.xlane.xlu2 %1871 }
0x10b2   :  { %v1876_v54 = vmul.f32 %v1872_v41, %v2493_v57 }
0x10b4   :  { %v1878_v47 = vadd.f32 1e-05, %v1876_v54 }
0x10b6   :  { %2194 = vrsqrt.f32 %v1878_v47  ;;  %vm1886_vm12 = vweird.f32 %v1878_v47 }
0x10bc   :  { %v2195_v46 = vpop.eup %2194 }
0x10bd   :  { %v1881_v48 = vmul.f32 %v2195_v46, %v1878_v47  ;;  %vm1887_vm15 = vweird.f32 %v2195_v46 }
0x10be   :  { %vm1888_vm13 = vmor %vm1886_vm12, %vm1887_vm15 }
0x10bf   :  { %v1882_v49 = vmul.f32 %v2195_v46, %v1881_v48  ;;  %v1875_v42 = vpop.xlane.xlu0 %1874 }
0x10c0   :  { %v1877_v50 = vmul.f32 %v1875_v42, %v2493_v57 }
0x10c1   :  { %v1883_v52 = vmul.f32 0.5, %v1882_v49 }
0x10c2   :  { %v1879_v34 = vadd.f32 1e-05, %v1877_v50 }
0x10c3   :  { %v1884_v37 = vsub.f32 1.5, %v1883_v52 }
0x10c4   :  { %2196 = vrsqrt.f32 %v1879_v34  ;;  %vm1896_vm2 = vweird.f32 %v1879_v34 }
0x10c5   :  { %v1885_v18 = vmul.f32 %v2195_v46, %v1884_v37 }
0x10c7   :  { %v1889_v61 = vsel %vm1888_vm13, %v2195_v46, %v1885_v18 }
0x10c8   :  { %v1900_v27 = vmul.f32 %v1889_v61, %v1866_v36 }
0x10ca   :  { %v2197_v20 = vpop.eup %2196  ;;  %v1903_v60 = vmul.f32 %v1902_v55, %v1900_v27 }
0x10cb   :  { %v1891_v5 = vmul.f32 %v2197_v20, %v1879_v34  ;;  %vm1897_vm14 = vweird.f32 %v2197_v20 }
0x10cc   :  { %v1906_v26 = vadd.f32 %v1905_v4, %v1903_v60  ;;  %vm1898_vm3 = vmor %vm1896_vm2, %vm1897_vm14 }
0x10cd   :  { %v1892_v40 = vmul.f32 %v2197_v20, %v1891_v5 }
0x10ce   :  { %v1909_v62 = vsel %vm61_vm0, %v1906_v26, 0.0 }
0x10cf   :  { %v1893_v31 = vmul.f32 0.5, %v1892_v40  ;;  %1910 = vadd.xlane.f32.xlu1 %v1909_v62 }
0x10d1   :  { %v1894_v63 = vsub.f32 1.5, %v1893_v31 }
0x10d3   :  { %v1895_v1 = vmul.f32 %v2197_v20, %v1894_v63 }
0x10d5   :  { %v1899_v2 = vsel %vm1898_vm3, %v2197_v20, %v1895_v1 }
0x10d6   :  { %v1901_v21 = vmul.f32 %v1899_v2, %v1867_v38 }
0x10d8   :  { %v1904_v6 = vmul.f32 %v1902_v55, %v1901_v21 }
0x10da   :  { %v1907_v7 = vadd.f32 %v1905_v4, %v1904_v6 }
0x10dc   :  { %v1912_v19 = vsel %vm61_vm0, %v1907_v7, 0.0 }
0x10dd   :  { %1913 = vadd.xlane.f32.xlu2 %v1912_v19 }
0x1142   :  { %v1911_v10 = vpop.xlane.xlu1 %1910 }
0x1143   :  { %v1915_v44 = vmul.f32 %v1911_v10, %v2493_v57 }
0x1145   :  { %v1917_v8 = vsub.f32 %v1906_v26, %v1915_v44 }
0x1147   :  { %v1919_v9 = vmul.f32 %v1917_v8, %v1917_v8 }
0x1149   :  { %v1921_v12 = vsel %vm61_vm0, %v1919_v9, 0.0 }
0x114a   :  { %1922 = vadd.xlane.f32.xlu0 %v1921_v12 }
0x1150   :  { %v1914_v0 = vpop.xlane.xlu2 %1913 }
0x1151   :  { %v1916_v3 = vmul.f32 %v1914_v0, %v2493_v57 }
0x1153   :  { %v1918_v13 = vsub.f32 %v1907_v7, %v1916_v3 }
0x1155   :  { %v1920_v15 = vmul.f32 %v1918_v13, %v1918_v13 }
0x1157   :  { %v1924_v16 = vsel %vm61_vm0, %v1920_v15, 0.0 }
0x1158   :  { %1925 = vadd.xlane.f32.xlu1 %v1924_v16 }
0x11bd   :  { %v1923_v59 = vpop.xlane.xlu0 %1922 }
0x11be   :  { %v1927_v22 = vmul.f32 %v1923_v59, %v2493_v57 }
0x11c0   :  { %v1929_v56 = vadd.f32 1e-05, %v1927_v22 }
0x11c2   :  { %2198 = vrsqrt.f32 %v1929_v56  ;;  %vm1937_vm5 = vweird.f32 %v1929_v56 }
0x11c8   :  { %v2199_v51 = vpop.eup %2198 }
0x11c9   :  { %v1932_v53 = vmul.f32 %v2199_v51, %v1929_v56  ;;  %vm1938_vm4 = vweird.f32 %v2199_v51 }
0x11ca   :  { %vm1939_vm8 = vmor %vm1937_vm5, %vm1938_vm4 }
0x11cb   :  { %v1933_v23 = vmul.f32 %v2199_v51, %v1932_v53  ;;  %v1926_v11 = vpop.xlane.xlu1 %1925 }
0x11cc   :  { %v1928_v24 = vmul.f32 %v1926_v11, %v2493_v57 }
0x11cd   :  { %v1934_v25 = vmul.f32 0.5, %v1933_v23 }
0x11ce   :  { %v1930_v58 = vadd.f32 1e-05, %v1928_v24 }
0x11cf   :  { %v1935_v28 = vsub.f32 1.5, %v1934_v25 }
0x11d0   :  { %2200 = vrsqrt.f32 %v1930_v58  ;;  %vm1947_vm6 = vweird.f32 %v1930_v58 }
0x11d1   :  { %v1936_v30 = vmul.f32 %v2199_v51, %v1935_v28 }
0x11d3   :  { %v1940_v32 = vsel %vm1939_vm8, %v2199_v51, %v1936_v30 }
0x11d4   :  { %v1951_v36 = vmul.f32 %v1940_v32, %v1917_v8 }
0x11d6   :  { %v2201_v35 = vpop.eup %2200  ;;  %v1954_v17 = vmul.f32 %v1953_v29, %v1951_v36 }
0x11d7   :  { %v1942_v45 = vmul.f32 %v2201_v35, %v1930_v58  ;;  %vm1948_vm1 = vweird.f32 %v2201_v35 }
0x11d8   :  { %v1957_v57 = vadd.f32 %v1956_v33, %v1954_v17  ;;  %vm1949_vm7 = vmor %vm1947_vm6, %vm1948_vm1 }
0x11d9   :  { %v1943_v38 = vmul.f32 %v2201_v35, %v1942_v45 }
0x11da   :  { %1959 = vst.msk [vmem:[#allocation2] sm:$0xff] %vm61_vm0, %v1957_v57 }
0x11db   :  { %v1944_v43 = vmul.f32 0.5, %v1943_v38 }
0x11dd   :  { %v1945_v39 = vsub.f32 1.5, %v1944_v43 }
0x11df   :  { %v1946_v41 = vmul.f32 %v2201_v35, %v1945_v39 }
0x11e1   :  { %v1950_v54 = vsel %vm1949_vm7, %v2201_v35, %v1946_v41 }
0x11e2   :  { %v1952_v47 = vmul.f32 %v1950_v54, %v1918_v13 }
0x11e4   :  { %v1955_v46 = vmul.f32 %v1953_v29, %v1952_v47 }
0x11e6   :  { %v1958_v48 = vadd.f32 %v1956_v33, %v1955_v46 }
0x11e8   :  { %1960 = vst.msk [vmem:[#allocation2 + $0x8] sm:$0xff] %vm61_vm0, %v1958_v48 }
0x11e9   :  { %1973 = dma.vmem_to_hbm [thread:$0]  %s1966_s7, 256, %s1968_s15, [#allocation3], %s2238_s16, %s2238_s16, %s2233_s27  }
0x11ea   :  { %2226 = dma.done.wait [#allocation3], 256  }
0x11eb   :  { %2227 = vsyncadd [#allocation3], 4294967040 }
0x11ec   :  { %1978 = vsyncpa [#allocation3], 1 }

</bundles_post_ra>
